<compile_context>
chip_gen: v7x
topology: tpu7x:2x2x1
jax: 0.10.0
libtpu: 0.0.40
codegen_flags: <defaults>
</compile_context>

<pallas_src>
import functools

import jax
import jax.numpy as jnp
from jax import lax
from jax.experimental import pallas as pl
from jax.experimental.pallas import tpu as pltpu


# ------------------------------ fused kernel -------------------------------- #

def _fused_kernel(x_ref, mask_ref,
                  enc_tok_ref, enc_w_ref, enc_b_ref,
                  proj_w1_ref, proj_b1_ref, proj_a_ref, proj_w2_ref, proj_b2_ref,
                  pred_a_ref, pred_w_ref, pred_b_ref,
                  e2d_w_ref, dec_tok_ref, dec_w_ref, dec_b_ref,
                  *rest,
                  num_remasking, alpha_l, lam, inv_keep, inv_mask):
    remask_refs = rest[:num_remasking]
    o_ref = rest[num_remasking]

    eps2 = 1e-24  # (F.normalize eps = 1e-12) ** 2

    x = x_ref[...]                       # [TM, IN]
    m = mask_ref[...]                    # [TM, 1], 1.0 on masked rows
    keep_w = 1.0 - m                     # hoisted complement

    # --- encoding_mask_noise + encoder (and weight-tied EMA encoder on x) ---
    enc_w = enc_w_ref[...]
    enc_b = enc_b_ref[...]
    use_x = x * keep_w + enc_tok_ref[...] * m
    enc_rep = jnp.dot(use_x, enc_w, preferred_element_type=jnp.float32) + enc_b
    tgt_raw = jnp.dot(x, enc_w, preferred_element_type=jnp.float32) + enc_b

    # --- shared projector (projector / projector_ema are weight-tied) ---
    proj_w1 = proj_w1_ref[...]
    proj_b1 = proj_b1_ref[...]
    proj_w2 = proj_w2_ref[...]
    proj_b2 = proj_b2_ref[...]
    a_p = proj_a_ref[...]                # (1,1) PReLU slope

    def projector(v):
        h1 = jnp.dot(v, proj_w1, preferred_element_type=jnp.float32) + proj_b1
        h1 = jnp.where(h1 > 0, h1, a_p * h1)
        return jnp.dot(h1, proj_w2, preferred_element_type=jnp.float32) + proj_b2

    latent_target = projector(tgt_raw)   # EMA/target branch (no_grad in torch)
    pred_in = projector(enc_rep)

    # --- predictor: PReLU -> Linear ---
    a_q = pred_a_ref[...]
    hp = jnp.where(pred_in > 0, pred_in, a_q * pred_in)
    latent_pred = (jnp.dot(hp, pred_w_ref[...], preferred_element_type=jnp.float32)
                   + pred_b_ref[...])

    # --- latent sce loss (alpha = 1), masked mean over keep rows ---
    pn = latent_pred * lax.rsqrt(
        jnp.maximum(jnp.sum(latent_pred * latent_pred, axis=-1, keepdims=True), eps2))
    tn = latent_target * lax.rsqrt(
        jnp.maximum(jnp.sum(latent_target * latent_target, axis=-1, keepdims=True), eps2))
    d_lat = 1.0 - jnp.sum(pn * tn, axis=-1, keepdims=True)      # [TM, 1]
    lat_sum = jnp.sum(keep_w * d_lat)

    # --- encoder_to_decoder (bias-free) ---
    origin_rep = jnp.dot(enc_rep, e2d_w_ref[...], preferred_element_type=jnp.float32)

    # hoisted: x normalization is identical for every remask iteration
    xn = x * lax.rsqrt(jnp.maximum(jnp.sum(x * x, axis=-1, keepdims=True), eps2))
    dec_tok = dec_tok_ref[...]
    dec_w = dec_w_ref[...]
    dec_b = dec_b_ref[...]

    rec_sum = jnp.float32(0.0)
    for r in range(num_remasking):       # static, small (num_remasking)
        rm = remask_refs[r][...]                                  # [TM, 1]
        rep = origin_rep * (1.0 - rm) + dec_tok * rm
        recon = jnp.dot(rep, dec_w, preferred_element_type=jnp.float32) + dec_b
        rn = recon * lax.rsqrt(
            jnp.maximum(jnp.sum(recon * recon, axis=-1, keepdims=True), eps2))
        d = 1.0 - jnp.sum(xn * rn, axis=-1, keepdims=True)        # [TM, 1]
        if float(alpha_l) == int(alpha_l):                        # integer power
            dp = d
            for _ in range(int(alpha_l) - 1):
                dp = dp * d
        else:
            dp = d ** alpha_l
        rec_sum = rec_sum + jnp.sum(m * dp)

    contrib = inv_mask * rec_sum + lam * inv_keep * lat_sum
    # lane-dense full-block store (no masked vst); wrapper reads [i, 0, 0]
    o_ref[...] = jnp.full((1, 8, 128), contrib, jnp.float32)


# ------------------------- parameters (synthetic) --------------------------- #

def init_params(key, in_dim, num_hidden, proj_hidden=256):
    ks = jax.random.split(key, 16)

    def lin(kw, kb, fan_in, fan_out):
        bound = 1.0 / jnp.sqrt(jnp.float32(fan_in))
        w = jax.random.uniform(kw, (fan_in, fan_out), jnp.float32, -bound, bound)
        b = jax.random.uniform(kb, (fan_out,), jnp.float32, -bound, bound)
        return w, b

    def xavier(k, shape):
        fan_in, fan_out = shape[-1], shape[0] if len(shape) > 1 else shape[-1]
        std = jnp.sqrt(2.0 / (fan_in + fan_out))
        return std * jax.random.normal(k, shape, jnp.float32)

    p = {}
    # encoder ('linear'): Linear(in_dim, num_hidden); encoder_ema shares weights
    p["enc_w"], p["enc_b"] = lin(ks[0], ks[1], in_dim, num_hidden)
    # decoder ('linear'): Linear(num_hidden, in_dim)
    p["dec_w"], p["dec_b"] = lin(ks[2], ks[3], num_hidden, in_dim)
    # encoder_to_decoder: Linear(H, H, bias=False), xavier_normal gain=1.414
    p["e2d_w"] = 1.414 * xavier(ks[4], (num_hidden, num_hidden))
    # mask tokens (xavier_normal)
    p["enc_mask_token"] = xavier(ks[5], (1, in_dim))
    p["dec_mask_token"] = xavier(ks[6], (1, num_hidden))
    # projector: Linear(H,256) -> PReLU -> Linear(256,H); projector_ema ties weights
    p["proj_w1"], p["proj_b1"] = lin(ks[7], ks[8], num_hidden, proj_hidden)
    p["proj_a"] = jnp.array(0.25, jnp.float32)
    p["proj_w2"], p["proj_b2"] = lin(ks[9], ks[10], proj_hidden, num_hidden)
    # predictor: PReLU -> Linear(H,H)
    p["pred_a"] = jnp.array(0.25, jnp.float32)
    p["pred_w"], p["pred_b"] = lin(ks[11], ks[12], num_hidden, num_hidden)
    return p


# ------------------------------- forward ------------------------------------ #

def premodel_forward(params, x, key, *, mask_rate=0.3, remask_rate=0.5,
                     num_remasking=2, lam=1.0, alpha_l=2.0, tm=32):
    n, in_dim = x.shape
    assert n % tm == 0 and tm % 8 == 0, "row tile must divide N and be a multiple of 8"
    nt = n // tm

    keys = jax.random.split(key, 1 + num_remasking)

    # encoding_mask_noise mask (static counts, dynamic indices -> 0/1 column)
    num_mask = int(mask_rate * n)
    num_keep = n - num_mask
    perm = jax.random.permutation(keys[0], n)
    mask_col = jnp.zeros((n, 1), jnp.float32).at[perm[:num_mask], 0].set(1.0)

    # random_remask masks (one 0/1 column per remask iteration)
    num_remask = int(remask_rate * n)
    remask_cols = []
    for i in range(num_remasking):
        p2 = jax.random.permutation(keys[1 + i], n)
        remask_cols.append(jnp.zeros((n, 1), jnp.float32).at[p2[:num_remask], 0].set(1.0))

    kernel = functools.partial(
        _fused_kernel,
        num_remasking=num_remasking,
        alpha_l=alpha_l, lam=lam,
        inv_keep=1.0 / num_keep, inv_mask=1.0 / num_mask)

    operands = [
        x, mask_col,
        params["enc_mask_token"], params["enc_w"], params["enc_b"].reshape(1, -1),
        params["proj_w1"], params["proj_b1"].reshape(1, -1), params["proj_a"].reshape(1, 1),
        params["proj_w2"], params["proj_b2"].reshape(1, -1),
        params["pred_a"].reshape(1, 1), params["pred_w"], params["pred_b"].reshape(1, -1),
        params["e2d_w"],
        params["dec_mask_token"], params["dec_w"], params["dec_b"].reshape(1, -1),
    ] + remask_cols

    def const_spec(arr):
        nd = arr.ndim
        return pl.BlockSpec(arr.shape, lambda i, _nd=nd: (0,) * _nd)

    row_spec_x = pl.BlockSpec((tm, in_dim), lambda i: (i, 0))
    row_spec_1 = pl.BlockSpec((tm, 1), lambda i: (i, 0))

    in_specs = ([row_spec_x, row_spec_1]
                + [const_spec(a) for a in operands[2:17]]
                + [row_spec_1] * num_remasking)

    partials = pl.pallas_call(
        kernel,
        out_shape=jax.ShapeDtypeStruct((nt, 8, 128), jnp.float32),
        grid_spec=pltpu.PrefetchScalarGridSpec(
            num_scalar_prefetch=0,
            grid=(nt,),
            in_specs=in_specs,
            out_specs=pl.BlockSpec((1, 8, 128), lambda i: (i, 0, 0)),
        ),
        compiler_params=pltpu.CompilerParams(
            dimension_semantics=("parallel",)),
    )(*operands)

    # tiny final combine of nt per-tile partial losses
    return jnp.sum(partials[:, 0, 0])


# --------------------------------- main -------------------------------------- #

if __name__ == "__main__":
    N_NODES, IN_DIM, NUM_HIDDEN = 64, 16, 32   # nhead=4 divides num_hidden
    NUM_REMASKING = 2
    TM = 32                                    # 2 node tiles -> exercises the grid

    root = jax.random.PRNGKey(0)
    k_param, k_x, k_fwd = jax.random.split(root, 3)

    params = init_params(k_param, IN_DIM, NUM_HIDDEN)
    x = jax.random.normal(k_x, (N_NODES, IN_DIM), jnp.float32)

    fwd = jax.jit(functools.partial(premodel_forward,
                                    mask_rate=0.3, remask_rate=0.5,
                                    num_remasking=NUM_REMASKING,
                                    lam=1.0, alpha_l=2.0, tm=TM))
    loss = fwd(params, x, k_fwd)
    jax.block_until_ready(loss)
    assert loss.shape == () and bool(jnp.isfinite(loss))
    print("KERNEL_OK")
</pallas_src>

<mosaic_0001>
module attributes {stable_mosaic.version = 11 : i64} {
  func.func @_fused_kernel(%arg0: i32, %arg1: memref<32x16xf32, #tpu.memory_space<vmem>>, %arg2: memref<32x1xf32, #tpu.memory_space<vmem>>, %arg3: memref<1x16xf32, #tpu.memory_space<vmem>>, %arg4: memref<16x32xf32, #tpu.memory_space<vmem>>, %arg5: memref<1x32xf32, #tpu.memory_space<vmem>>, %arg6: memref<32x256xf32, #tpu.memory_space<vmem>>, %arg7: memref<1x256xf32, #tpu.memory_space<vmem>>, %arg8: memref<1x1xf32, #tpu.memory_space<vmem>>, %arg9: memref<256x32xf32, #tpu.memory_space<vmem>>, %arg10: memref<1x32xf32, #tpu.memory_space<vmem>>, %arg11: memref<1x1xf32, #tpu.memory_space<vmem>>, %arg12: memref<32x32xf32, #tpu.memory_space<vmem>>, %arg13: memref<1x32xf32, #tpu.memory_space<vmem>>, %arg14: memref<32x32xf32, #tpu.memory_space<vmem>>, %arg15: memref<1x32xf32, #tpu.memory_space<vmem>>, %arg16: memref<32x16xf32, #tpu.memory_space<vmem>>, %arg17: memref<1x16xf32, #tpu.memory_space<vmem>>, %arg18: memref<32x1xf32, #tpu.memory_space<vmem>>, %arg19: memref<32x1xf32, #tpu.memory_space<vmem>>, %arg20: memref<1x8x128xf32, #tpu.memory_space<vmem>>) attributes {dimension_semantics = [#tpu.dimension_semantics<parallel>], iteration_bounds = array<i64: 2>, scalar_prefetch = 0 : i64, scratch_operands = 0 : i64, tpu.core_type = #tpu.core_type<tc>, window_params = [{transform_indices = @transform_0, window_bounds = array<i64: 32, 16>}, {transform_indices = @transform_1, window_bounds = array<i64: 32, 1>}, {pipeline_mode = #tpu.pipeline_mode<synchronous>, transform_indices = @transform_2, window_bounds = array<i64: 1, 16>}, {pipeline_mode = #tpu.pipeline_mode<synchronous>, transform_indices = @transform_3, window_bounds = array<i64: 16, 32>}, {pipeline_mode = #tpu.pipeline_mode<synchronous>, transform_indices = @transform_4, window_bounds = array<i64: 1, 32>}, {pipeline_mode = #tpu.pipeline_mode<synchronous>, transform_indices = @transform_5, window_bounds = array<i64: 32, 256>}, {pipeline_mode = #tpu.pipeline_mode<synchronous>, transform_indices = @transform_6, window_bounds = array<i64: 1, 256>}, {pipeline_mode = #tpu.pipeline_mode<synchronous>, transform_indices = @transform_7, window_bounds = array<i64: 1, 1>}, {pipeline_mode = #tpu.pipeline_mode<synchronous>, transform_indices = @transform_8, window_bounds = array<i64: 256, 32>}, {pipeline_mode = #tpu.pipeline_mode<synchronous>, transform_indices = @transform_9, window_bounds = array<i64: 1, 32>}, {pipeline_mode = #tpu.pipeline_mode<synchronous>, transform_indices = @transform_10, window_bounds = array<i64: 1, 1>}, {pipeline_mode = #tpu.pipeline_mode<synchronous>, transform_indices = @transform_11, window_bounds = array<i64: 32, 32>}, {pipeline_mode = #tpu.pipeline_mode<synchronous>, transform_indices = @transform_12, window_bounds = array<i64: 1, 32>}, {pipeline_mode = #tpu.pipeline_mode<synchronous>, transform_indices = @transform_13, window_bounds = array<i64: 32, 32>}, {pipeline_mode = #tpu.pipeline_mode<synchronous>, transform_indices = @transform_14, window_bounds = array<i64: 1, 32>}, {pipeline_mode = #tpu.pipeline_mode<synchronous>, transform_indices = @transform_15, window_bounds = array<i64: 32, 16>}, {pipeline_mode = #tpu.pipeline_mode<synchronous>, transform_indices = @transform_16, window_bounds = array<i64: 1, 16>}, {transform_indices = @transform_17, window_bounds = array<i64: 32, 1>}, {transform_indices = @transform_18, window_bounds = array<i64: 32, 1>}, {transform_indices = @transform_19, window_bounds = array<i64: 1, 8, 128>}]} {
    %c0 = arith.constant 0 : index
    %c0_0 = arith.constant 0 : index
    %0 = vector.load %arg1[%c0, %c0_0] : memref<32x16xf32, #tpu.memory_space<vmem>>, vector<32x16xf32>
    %c0_1 = arith.constant 0 : index
    %c0_2 = arith.constant 0 : index
    %1 = vector.load %arg2[%c0_1, %c0_2] : memref<32x1xf32, #tpu.memory_space<vmem>>, vector<32x1xf32>
    %cst = arith.constant 1.000000e+00 : f32
    %2 = vector.broadcast %cst : f32 to vector<32x1xf32>
    %3 = arith.subf %2, %1 : vector<32x1xf32>
    %c0_3 = arith.constant 0 : index
    %c0_4 = arith.constant 0 : index
    %4 = vector.load %arg4[%c0_3, %c0_4] : memref<16x32xf32, #tpu.memory_space<vmem>>, vector<16x32xf32>
    %c0_5 = arith.constant 0 : index
    %c0_6 = arith.constant 0 : index
    %5 = vector.load %arg5[%c0_5, %c0_6] : memref<1x32xf32, #tpu.memory_space<vmem>>, vector<1x32xf32>
    %6 = vector.broadcast %3 : vector<32x1xf32> to vector<32x16xf32>
    %7 = arith.mulf %0, %6 : vector<32x16xf32>
    %c0_7 = arith.constant 0 : index
    %c0_8 = arith.constant 0 : index
    %8 = vector.load %arg3[%c0_7, %c0_8] : memref<1x16xf32, #tpu.memory_space<vmem>>, vector<1x16xf32>
    %9 = vector.broadcast %8 : vector<1x16xf32> to vector<32x16xf32>
    %10 = vector.broadcast %1 : vector<32x1xf32> to vector<32x16xf32>
    %11 = arith.mulf %9, %10 : vector<32x16xf32>
    %12 = arith.addf %7, %11 : vector<32x16xf32>
    %cst_9 = arith.constant dense<0.000000e+00> : vector<32x32xf32>
    %13 = tpu.matmul %12, %4, %cst_9 {dimension_numbers = #tpu.dot_dimension_numbers<[1], [0], [0], [1], [0, 0, 1, 1], [], []>} : vector<32x16xf32>, vector<16x32xf32>, vector<32x32xf32> -> vector<32x32xf32>
    %14 = vector.broadcast %5 : vector<1x32xf32> to vector<32x32xf32>
    %15 = arith.addf %13, %14 : vector<32x32xf32>
    %cst_10 = arith.constant dense<0.000000e+00> : vector<32x32xf32>
    %16 = tpu.matmul %0, %4, %cst_10 {dimension_numbers = #tpu.dot_dimension_numbers<[1], [0], [0], [1], [0, 0, 1, 1], [], []>} : vector<32x16xf32>, vector<16x32xf32>, vector<32x32xf32> -> vector<32x32xf32>
    %17 = vector.broadcast %5 : vector<1x32xf32> to vector<32x32xf32>
    %18 = arith.addf %16, %17 : vector<32x32xf32>
    %c0_11 = arith.constant 0 : index
    %c0_12 = arith.constant 0 : index
    %19 = vector.load %arg6[%c0_11, %c0_12] : memref<32x256xf32, #tpu.memory_space<vmem>>, vector<32x256xf32>
    %c0_13 = arith.constant 0 : index
    %c0_14 = arith.constant 0 : index
    %20 = vector.load %arg7[%c0_13, %c0_14] : memref<1x256xf32, #tpu.memory_space<vmem>>, vector<1x256xf32>
    %c0_15 = arith.constant 0 : index
    %c0_16 = arith.constant 0 : index
    %21 = vector.load %arg9[%c0_15, %c0_16] : memref<256x32xf32, #tpu.memory_space<vmem>>, vector<256x32xf32>
    %c0_17 = arith.constant 0 : index
    %c0_18 = arith.constant 0 : index
    %22 = vector.load %arg10[%c0_17, %c0_18] : memref<1x32xf32, #tpu.memory_space<vmem>>, vector<1x32xf32>
    %c0_19 = arith.constant 0 : index
    %c0_20 = arith.constant 0 : index
    %23 = vector.load %arg8[%c0_19, %c0_20] : memref<1x1xf32, #tpu.memory_space<vmem>>, vector<1x1xf32>
    %cst_21 = arith.constant dense<0.000000e+00> : vector<32x256xf32>
    %24 = tpu.matmul %18, %19, %cst_21 {dimension_numbers = #tpu.dot_dimension_numbers<[1], [0], [0], [1], [0, 0, 1, 1], [], []>} : vector<32x32xf32>, vector<32x256xf32>, vector<32x256xf32> -> vector<32x256xf32>
    %25 = vector.broadcast %20 : vector<1x256xf32> to vector<32x256xf32>
    %26 = arith.addf %24, %25 : vector<32x256xf32>
    %cst_22 = arith.constant 0.000000e+00 : f32
    %27 = vector.broadcast %cst_22 : f32 to vector<32x256xf32>
    %28 = arith.cmpf ogt, %26, %27 : vector<32x256xf32>
    %29 = vector.broadcast %23 : vector<1x1xf32> to vector<32x256xf32>
    %30 = arith.mulf %29, %26 : vector<32x256xf32>
    %31 = arith.select %28, %26, %30 : vector<32x256xi1>, vector<32x256xf32>
    %cst_23 = arith.constant dense<0.000000e+00> : vector<32x32xf32>
    %32 = tpu.matmul %31, %21, %cst_23 {dimension_numbers = #tpu.dot_dimension_numbers<[1], [0], [0], [1], [0, 0, 1, 1], [], []>} : vector<32x256xf32>, vector<256x32xf32>, vector<32x32xf32> -> vector<32x32xf32>
    %33 = vector.broadcast %22 : vector<1x32xf32> to vector<32x32xf32>
    %34 = arith.addf %32, %33 : vector<32x32xf32>
    %cst_24 = arith.constant dense<0.000000e+00> : vector<32x256xf32>
    %35 = tpu.matmul %15, %19, %cst_24 {dimension_numbers = #tpu.dot_dimension_numbers<[1], [0], [0], [1], [0, 0, 1, 1], [], []>} : vector<32x32xf32>, vector<32x256xf32>, vector<32x256xf32> -> vector<32x256xf32>
    %36 = vector.broadcast %20 : vector<1x256xf32> to vector<32x256xf32>
    %37 = arith.addf %35, %36 : vector<32x256xf32>
    %cst_25 = arith.constant 0.000000e+00 : f32
    %38 = vector.broadcast %cst_25 : f32 to vector<32x256xf32>
    %39 = arith.cmpf ogt, %37, %38 : vector<32x256xf32>
    %40 = vector.broadcast %23 : vector<1x1xf32> to vector<32x256xf32>
    %41 = arith.mulf %40, %37 : vector<32x256xf32>
    %42 = arith.select %39, %37, %41 : vector<32x256xi1>, vector<32x256xf32>
    %cst_26 = arith.constant dense<0.000000e+00> : vector<32x32xf32>
    %43 = tpu.matmul %42, %21, %cst_26 {dimension_numbers = #tpu.dot_dimension_numbers<[1], [0], [0], [1], [0, 0, 1, 1], [], []>} : vector<32x256xf32>, vector<256x32xf32>, vector<32x32xf32> -> vector<32x32xf32>
    %44 = vector.broadcast %22 : vector<1x32xf32> to vector<32x32xf32>
    %45 = arith.addf %43, %44 : vector<32x32xf32>
    %c0_27 = arith.constant 0 : index
    %c0_28 = arith.constant 0 : index
    %46 = vector.load %arg11[%c0_27, %c0_28] : memref<1x1xf32, #tpu.memory_space<vmem>>, vector<1x1xf32>
    %cst_29 = arith.constant 0.000000e+00 : f32
    %47 = vector.broadcast %cst_29 : f32 to vector<32x32xf32>
    %48 = arith.cmpf ogt, %45, %47 : vector<32x32xf32>
    %49 = vector.broadcast %46 : vector<1x1xf32> to vector<32x32xf32>
    %50 = arith.mulf %49, %45 : vector<32x32xf32>
    %51 = arith.select %48, %45, %50 : vector<32x32xi1>, vector<32x32xf32>
    %c0_30 = arith.constant 0 : index
    %c0_31 = arith.constant 0 : index
    %52 = vector.load %arg12[%c0_30, %c0_31] : memref<32x32xf32, #tpu.memory_space<vmem>>, vector<32x32xf32>
    %cst_32 = arith.constant dense<0.000000e+00> : vector<32x32xf32>
    %53 = tpu.matmul %51, %52, %cst_32 {dimension_numbers = #tpu.dot_dimension_numbers<[1], [0], [0], [1], [0, 0, 1, 1], [], []>} : vector<32x32xf32>, vector<32x32xf32>, vector<32x32xf32> -> vector<32x32xf32>
    %c0_33 = arith.constant 0 : index
    %c0_34 = arith.constant 0 : index
    %54 = vector.load %arg13[%c0_33, %c0_34] : memref<1x32xf32, #tpu.memory_space<vmem>>, vector<1x32xf32>
    %55 = vector.broadcast %54 : vector<1x32xf32> to vector<32x32xf32>
    %56 = arith.addf %53, %55 : vector<32x32xf32>
    %57 = arith.mulf %56, %56 : vector<32x32xf32>
    %cst_35 = arith.constant dense<0.000000e+00> : vector<32xf32>
    %58 = vector.multi_reduction <add>, %57, %cst_35 [1] : vector<32x32xf32> to vector<32xf32>
    %59 = vector.shape_cast %58 : vector<32xf32> to vector<32x1xf32>
    %cst_36 = arith.constant 1.000000e-24 : f32
    %60 = vector.broadcast %cst_36 : f32 to vector<32x1xf32>
    %61 = arith.maximumf %59, %60 : vector<32x1xf32>
    %62 = math.rsqrt %61 : vector<32x1xf32>
    %63 = vector.broadcast %62 : vector<32x1xf32> to vector<32x32xf32>
    %64 = arith.mulf %56, %63 : vector<32x32xf32>
    %65 = arith.mulf %34, %34 : vector<32x32xf32>
    %cst_37 = arith.constant dense<0.000000e+00> : vector<32xf32>
    %66 = vector.multi_reduction <add>, %65, %cst_37 [1] : vector<32x32xf32> to vector<32xf32>
    %67 = vector.shape_cast %66 : vector<32xf32> to vector<32x1xf32>
    %cst_38 = arith.constant 1.000000e-24 : f32
    %68 = vector.broadcast %cst_38 : f32 to vector<32x1xf32>
    %69 = arith.maximumf %67, %68 : vector<32x1xf32>
    %70 = math.rsqrt %69 : vector<32x1xf32>
    %71 = vector.broadcast %70 : vector<32x1xf32> to vector<32x32xf32>
    %72 = arith.mulf %34, %71 : vector<32x32xf32>
    %73 = arith.mulf %64, %72 : vector<32x32xf32>
    %cst_39 = arith.constant dense<0.000000e+00> : vector<32xf32>
    %74 = vector.multi_reduction <add>, %73, %cst_39 [1] : vector<32x32xf32> to vector<32xf32>
    %75 = vector.shape_cast %74 : vector<32xf32> to vector<32x1xf32>
    %cst_40 = arith.constant 1.000000e+00 : f32
    %76 = vector.broadcast %cst_40 : f32 to vector<32x1xf32>
    %77 = arith.subf %76, %75 : vector<32x1xf32>
    %78 = arith.mulf %3, %77 : vector<32x1xf32>
    %79 = vector.shape_cast %78 : vector<32x1xf32> to vector<1x32x1xf32>
    %cst_41 = arith.constant dense<0.000000e+00> : vector<1xf32>
    %80 = vector.multi_reduction <add>, %79, %cst_41 [1, 2] : vector<1x32x1xf32> to vector<1xf32>
    %81 = vector.shape_cast %80 : vector<1xf32> to vector<1x1x1xf32>
    %82 = vector.extract %81[0, 0, 0] : f32 from vector<1x1x1xf32>
    %c0_42 = arith.constant 0 : index
    %c0_43 = arith.constant 0 : index
    %83 = vector.load %arg14[%c0_42, %c0_43] : memref<32x32xf32, #tpu.memory_space<vmem>>, vector<32x32xf32>
    %cst_44 = arith.constant dense<0.000000e+00> : vector<32x32xf32>
    %84 = tpu.matmul %15, %83, %cst_44 {dimension_numbers = #tpu.dot_dimension_numbers<[1], [0], [0], [1], [0, 0, 1, 1], [], []>} : vector<32x32xf32>, vector<32x32xf32>, vector<32x32xf32> -> vector<32x32xf32>
    %85 = arith.mulf %0, %0 : vector<32x16xf32>
    %cst_45 = arith.constant dense<0.000000e+00> : vector<32xf32>
    %86 = vector.multi_reduction <add>, %85, %cst_45 [1] : vector<32x16xf32> to vector<32xf32>
    %87 = vector.shape_cast %86 : vector<32xf32> to vector<32x1xf32>
    %cst_46 = arith.constant 1.000000e-24 : f32
    %88 = vector.broadcast %cst_46 : f32 to vector<32x1xf32>
    %89 = arith.maximumf %87, %88 : vector<32x1xf32>
    %90 = math.rsqrt %89 : vector<32x1xf32>
    %91 = vector.broadcast %90 : vector<32x1xf32> to vector<32x16xf32>
    %92 = arith.mulf %0, %91 : vector<32x16xf32>
    %c0_47 = arith.constant 0 : index
    %c0_48 = arith.constant 0 : index
    %93 = vector.load %arg15[%c0_47, %c0_48] : memref<1x32xf32, #tpu.memory_space<vmem>>, vector<1x32xf32>
    %c0_49 = arith.constant 0 : index
    %c0_50 = arith.constant 0 : index
    %94 = vector.load %arg16[%c0_49, %c0_50] : memref<32x16xf32, #tpu.memory_space<vmem>>, vector<32x16xf32>
    %c0_51 = arith.constant 0 : index
    %c0_52 = arith.constant 0 : index
    %95 = vector.load %arg17[%c0_51, %c0_52] : memref<1x16xf32, #tpu.memory_space<vmem>>, vector<1x16xf32>
    %c0_53 = arith.constant 0 : index
    %c0_54 = arith.constant 0 : index
    %96 = vector.load %arg18[%c0_53, %c0_54] : memref<32x1xf32, #tpu.memory_space<vmem>>, vector<32x1xf32>
    %cst_55 = arith.constant 1.000000e+00 : f32
    %97 = vector.broadcast %cst_55 : f32 to vector<32x1xf32>
    %98 = arith.subf %97, %96 : vector<32x1xf32>
    %99 = vector.broadcast %98 : vector<32x1xf32> to vector<32x32xf32>
    %100 = arith.mulf %84, %99 : vector<32x32xf32>
    %101 = vector.broadcast %93 : vector<1x32xf32> to vector<32x32xf32>
    %102 = vector.broadcast %96 : vector<32x1xf32> to vector<32x32xf32>
    %103 = arith.mulf %101, %102 : vector<32x32xf32>
    %104 = arith.addf %100, %103 : vector<32x32xf32>
    %cst_56 = arith.constant dense<0.000000e+00> : vector<32x16xf32>
    %105 = tpu.matmul %104, %94, %cst_56 {dimension_numbers = #tpu.dot_dimension_numbers<[1], [0], [0], [1], [0, 0, 1, 1], [], []>} : vector<32x32xf32>, vector<32x16xf32>, vector<32x16xf32> -> vector<32x16xf32>
    %106 = vector.broadcast %95 : vector<1x16xf32> to vector<32x16xf32>
    %107 = arith.addf %105, %106 : vector<32x16xf32>
    %108 = arith.mulf %107, %107 : vector<32x16xf32>
    %cst_57 = arith.constant dense<0.000000e+00> : vector<32xf32>
    %109 = vector.multi_reduction <add>, %108, %cst_57 [1] : vector<32x16xf32> to vector<32xf32>
    %110 = vector.shape_cast %109 : vector<32xf32> to vector<32x1xf32>
    %cst_58 = arith.constant 1.000000e-24 : f32
    %111 = vector.broadcast %cst_58 : f32 to vector<32x1xf32>
    %112 = arith.maximumf %110, %111 : vector<32x1xf32>
    %113 = math.rsqrt %112 : vector<32x1xf32>
    %114 = vector.broadcast %113 : vector<32x1xf32> to vector<32x16xf32>
    %115 = arith.mulf %107, %114 : vector<32x16xf32>
    %116 = arith.mulf %92, %115 : vector<32x16xf32>
    %cst_59 = arith.constant dense<0.000000e+00> : vector<32xf32>
    %117 = vector.multi_reduction <add>, %116, %cst_59 [1] : vector<32x16xf32> to vector<32xf32>
    %118 = vector.shape_cast %117 : vector<32xf32> to vector<32x1xf32>
    %cst_60 = arith.constant 1.000000e+00 : f32
    %119 = vector.broadcast %cst_60 : f32 to vector<32x1xf32>
    %120 = arith.subf %119, %118 : vector<32x1xf32>
    %121 = arith.mulf %120, %120 : vector<32x1xf32>
    %122 = arith.mulf %1, %121 : vector<32x1xf32>
    %123 = vector.shape_cast %122 : vector<32x1xf32> to vector<1x32x1xf32>
    %cst_61 = arith.constant dense<0.000000e+00> : vector<1xf32>
    %124 = vector.multi_reduction <add>, %123, %cst_61 [1, 2] : vector<1x32x1xf32> to vector<1xf32>
    %125 = vector.shape_cast %124 : vector<1xf32> to vector<1x1x1xf32>
    %126 = vector.extract %125[0, 0, 0] : f32 from vector<1x1x1xf32>
    %cst_62 = arith.constant 0.000000e+00 : f32
    %127 = arith.addf %cst_62, %126 : f32
    %c0_63 = arith.constant 0 : index
    %c0_64 = arith.constant 0 : index
    %128 = vector.load %arg19[%c0_63, %c0_64] : memref<32x1xf32, #tpu.memory_space<vmem>>, vector<32x1xf32>
    %cst_65 = arith.constant 1.000000e+00 : f32
    %129 = vector.broadcast %cst_65 : f32 to vector<32x1xf32>
    %130 = arith.subf %129, %128 : vector<32x1xf32>
    %131 = vector.broadcast %130 : vector<32x1xf32> to vector<32x32xf32>
    %132 = arith.mulf %84, %131 : vector<32x32xf32>
    %133 = vector.broadcast %93 : vector<1x32xf32> to vector<32x32xf32>
    %134 = vector.broadcast %128 : vector<32x1xf32> to vector<32x32xf32>
    %135 = arith.mulf %133, %134 : vector<32x32xf32>
    %136 = arith.addf %132, %135 : vector<32x32xf32>
    %cst_66 = arith.constant dense<0.000000e+00> : vector<32x16xf32>
    %137 = tpu.matmul %136, %94, %cst_66 {dimension_numbers = #tpu.dot_dimension_numbers<[1], [0], [0], [1], [0, 0, 1, 1], [], []>} : vector<32x32xf32>, vector<32x16xf32>, vector<32x16xf32> -> vector<32x16xf32>
    %138 = vector.broadcast %95 : vector<1x16xf32> to vector<32x16xf32>
    %139 = arith.addf %137, %138 : vector<32x16xf32>
    %140 = arith.mulf %139, %139 : vector<32x16xf32>
    %cst_67 = arith.constant dense<0.000000e+00> : vector<32xf32>
    %141 = vector.multi_reduction <add>, %140, %cst_67 [1] : vector<32x16xf32> to vector<32xf32>
    %142 = vector.shape_cast %141 : vector<32xf32> to vector<32x1xf32>
    %cst_68 = arith.constant 1.000000e-24 : f32
    %143 = vector.broadcast %cst_68 : f32 to vector<32x1xf32>
    %144 = arith.maximumf %142, %143 : vector<32x1xf32>
    %145 = math.rsqrt %144 : vector<32x1xf32>
    %146 = vector.broadcast %145 : vector<32x1xf32> to vector<32x16xf32>
    %147 = arith.mulf %139, %146 : vector<32x16xf32>
    %148 = arith.mulf %92, %147 : vector<32x16xf32>
    %cst_69 = arith.constant dense<0.000000e+00> : vector<32xf32>
    %149 = vector.multi_reduction <add>, %148, %cst_69 [1] : vector<32x16xf32> to vector<32xf32>
    %150 = vector.shape_cast %149 : vector<32xf32> to vector<32x1xf32>
    %cst_70 = arith.constant 1.000000e+00 : f32
    %151 = vector.broadcast %cst_70 : f32 to vector<32x1xf32>
    %152 = arith.subf %151, %150 : vector<32x1xf32>
    %153 = arith.mulf %152, %152 : vector<32x1xf32>
    %154 = arith.mulf %1, %153 : vector<32x1xf32>
    %155 = vector.shape_cast %154 : vector<32x1xf32> to vector<1x32x1xf32>
    %cst_71 = arith.constant dense<0.000000e+00> : vector<1xf32>
    %156 = vector.multi_reduction <add>, %155, %cst_71 [1, 2] : vector<1x32x1xf32> to vector<1xf32>
    %157 = vector.shape_cast %156 : vector<1xf32> to vector<1x1x1xf32>
    %158 = vector.extract %157[0, 0, 0] : f32 from vector<1x1x1xf32>
    %159 = arith.addf %127, %158 : f32
    %cst_72 = arith.constant 0.0526315793 : f32
    %160 = arith.mulf %cst_72, %159 : f32
    %cst_73 = arith.constant 0.0222222228 : f32
    %161 = arith.mulf %cst_73, %82 : f32
    %162 = arith.addf %160, %161 : f32
    %163 = vector.broadcast %162 : f32 to vector<1x8x128xf32>
    %c0_74 = arith.constant 0 : index
    %c0_75 = arith.constant 0 : index
    %c0_76 = arith.constant 0 : index
    %164 = vector.load %arg20[%c0_74, %c0_75, %c0_76] : memref<1x8x128xf32, #tpu.memory_space<vmem>>, vector<1x8x128xf32>
    tpu.vector_store %arg20[%c0_74, %c0_75, %c0_76], %163 {strides = array<i32>} : memref<1x8x128xf32, #tpu.memory_space<vmem>>, vector<1x8x128xf32>,
    return
  }
  func.func @transform_0(%arg0: i32) -> (i32, i32) {
    %c0_i32 = arith.constant 0 : i32
    %c0_i32_0 = arith.constant 0 : i32
    return %arg0, %c0_i32 : i32, i32
  }
  func.func @transform_1(%arg0: i32) -> (i32, i32) {
    %c0_i32 = arith.constant 0 : i32
    %c0_i32_0 = arith.constant 0 : i32
    return %arg0, %c0_i32 : i32, i32
  }
  func.func @transform_2(%arg0: i32) -> (i32, i32) {
    %c0_i32 = arith.constant 0 : i32
    %c0_i32_0 = arith.constant 0 : i32
    %c0_i32_1 = arith.constant 0 : i32
    return %c0_i32, %c0_i32_0 : i32, i32
  }
  func.func @transform_3(%arg0: i32) -> (i32, i32) {
    %c0_i32 = arith.constant 0 : i32
    %c0_i32_0 = arith.constant 0 : i32
    %c0_i32_1 = arith.constant 0 : i32
    return %c0_i32, %c0_i32_0 : i32, i32
  }
  func.func @transform_4(%arg0: i32) -> (i32, i32) {
    %c0_i32 = arith.constant 0 : i32
    %c0_i32_0 = arith.constant 0 : i32
    %c0_i32_1 = arith.constant 0 : i32
    return %c0_i32, %c0_i32_0 : i32, i32
  }
  func.func @transform_5(%arg0: i32) -> (i32, i32) {
    %c0_i32 = arith.constant 0 : i32
    %c0_i32_0 = arith.constant 0 : i32
    %c0_i32_1 = arith.constant 0 : i32
    return %c0_i32, %c0_i32_0 : i32, i32
  }
  func.func @transform_6(%arg0: i32) -> (i32, i32) {
    %c0_i32 = arith.constant 0 : i32
    %c0_i32_0 = arith.constant 0 : i32
    %c0_i32_1 = arith.constant 0 : i32
    return %c0_i32, %c0_i32_0 : i32, i32
  }
  func.func @transform_7(%arg0: i32) -> (i32, i32) {
    %c0_i32 = arith.constant 0 : i32
    %c0_i32_0 = arith.constant 0 : i32
    %c0_i32_1 = arith.constant 0 : i32
    return %c0_i32, %c0_i32_0 : i32, i32
  }
  func.func @transform_8(%arg0: i32) -> (i32, i32) {
    %c0_i32 = arith.constant 0 : i32
    %c0_i32_0 = arith.constant 0 : i32
    %c0_i32_1 = arith.constant 0 : i32
    return %c0_i32, %c0_i32_0 : i32, i32
  }
  func.func @transform_9(%arg0: i32) -> (i32, i32) {
    %c0_i32 = arith.constant 0 : i32
    %c0_i32_0 = arith.constant 0 : i32
    %c0_i32_1 = arith.constant 0 : i32
    return %c0_i32, %c0_i32_0 : i32, i32
  }
  func.func @transform_10(%arg0: i32) -> (i32, i32) {
    %c0_i32 = arith.constant 0 : i32
    %c0_i32_0 = arith.constant 0 : i32
    %c0_i32_1 = arith.constant 0 : i32
    return %c0_i32, %c0_i32_0 : i32, i32
  }
  func.func @transform_11(%arg0: i32) -> (i32, i32) {
    %c0_i32 = arith.constant 0 : i32
    %c0_i32_0 = arith.constant 0 : i32
    %c0_i32_1 = arith.constant 0 : i32
    return %c0_i32, %c0_i32_0 : i32, i32
  }
  func.func @transform_12(%arg0: i32) -> (i32, i32) {
    %c0_i32 = arith.constant 0 : i32
    %c0_i32_0 = arith.constant 0 : i32
    %c0_i32_1 = arith.constant 0 : i32
    return %c0_i32, %c0_i32_0 : i32, i32
  }
  func.func @transform_13(%arg0: i32) -> (i32, i32) {
    %c0_i32 = arith.constant 0 : i32
    %c0_i32_0 = arith.constant 0 : i32
    %c0_i32_1 = arith.constant 0 : i32
    return %c0_i32, %c0_i32_0 : i32, i32
  }
  func.func @transform_14(%arg0: i32) -> (i32, i32) {
    %c0_i32 = arith.constant 0 : i32
    %c0_i32_0 = arith.constant 0 : i32
    %c0_i32_1 = arith.constant 0 : i32
    return %c0_i32, %c0_i32_0 : i32, i32
  }
  func.func @transform_15(%arg0: i32) -> (i32, i32) {
    %c0_i32 = arith.constant 0 : i32
    %c0_i32_0 = arith.constant 0 : i32
    %c0_i32_1 = arith.constant 0 : i32
    return %c0_i32, %c0_i32_0 : i32, i32
  }
  func.func @transform_16(%arg0: i32) -> (i32, i32) {
    %c0_i32 = arith.constant 0 : i32
    %c0_i32_0 = arith.constant 0 : i32
    %c0_i32_1 = arith.constant 0 : i32
    return %c0_i32, %c0_i32_0 : i32, i32
  }
  func.func @transform_17(%arg0: i32) -> (i32, i32) {
    %c0_i32 = arith.constant 0 : i32
    %c0_i32_0 = arith.constant 0 : i32
    return %arg0, %c0_i32 : i32, i32
  }
  func.func @transform_18(%arg0: i32) -> (i32, i32) {
    %c0_i32 = arith.constant 0 : i32
    %c0_i32_0 = arith.constant 0 : i32
    return %arg0, %c0_i32 : i32, i32
  }
  func.func @transform_19(%arg0: i32) -> (i32, i32, i32) {
    %c0_i32 = arith.constant 0 : i32
    %c0_i32_0 = arith.constant 0 : i32
    %c0_i32_1 = arith.constant 0 : i32
    return %arg0, %c0_i32, %c0_i32_0 : i32, i32, i32
  }
}

</mosaic_0001>

<bundles_post_ra>
// kernel: premodel_forward.3
= control target key start
LH: loop header
LB: loop body
LE: loop exit
PB: predicated region body
PF: predicated region fallthrough
CT: control target
= control target key end

     0   :  { %s3493_s0 = inlined_call_operand.vmem [shape: f32[64,16], index: 0, kind: input, shape index: {}]   ;;  %s3494_s1 = inlined_call_operand.vmem [shape: f32[64,1], index: 1, kind: input, shape index: {}]   ;;  %s3495_s2 = inlined_call_operand.vmem [shape: f32[1,16], index: 2, kind: input, shape index: {}]   ;;  %s3496_s3 = inlined_call_operand.vmem [shape: f32[16,32], index: 3, kind: input, shape index: {}]   ;;  %s3497_s4 = inlined_call_operand.vmem [shape: f32[1,32], index: 4, kind: input, shape index: {}]   ;;  %s3498_s5 = inlined_call_operand.vmem [shape: f32[32,256], index: 5, kind: input, shape index: {}]   ;;  %s3499_s6 = inlined_call_operand.vmem [shape: f32[1,256], index: 6, kind: input, shape index: {}]   ;;  %s3500_s7 = inlined_call_operand.<no memory space> [shape: f32[1,1], index: 7, kind: input, shape index: {}]   ;;  %s3501_s8 = inlined_call_operand.vmem [shape: f32[256,32], index: 8, kind: input, shape index: {}]   ;;  %s3502_s9 = inlined_call_operand.vmem [shape: f32[1,32], index: 9, kind: input, shape index: {}]   ;;  %s3503_s11 = inlined_call_operand.vmem [shape: f32[32,32], index: 11, kind: input, shape index: {}]   ;;  %s3504_s12 = inlined_call_operand.vmem [shape: f32[1,32], index: 12, kind: input, shape index: {}]   ;;  %s3505_s13 = inlined_call_operand.vmem [shape: f32[32,32], index: 13, kind: input, shape index: {}]   ;;  %s3506_s14 = inlined_call_operand.vmem [shape: f32[1,32], index: 14, kind: input, shape index: {}]   ;;  %s3507_s15 = inlined_call_operand.vmem [shape: f32[32,16], index: 15, kind: input, shape index: {}]   ;;  %s3508_s16 = inlined_call_operand.vmem [shape: f32[1,16], index: 16, kind: input, shape index: {}]   ;;  %s3509_s17 = inlined_call_operand.vmem [shape: f32[64,1], index: 17, kind: input, shape index: {}]   ;;  %s3510_s18 = inlined_call_operand.vmem [shape: f32[64,1], index: 18, kind: input, shape index: {}]   ;;  %s3511_s19 = inlined_call_operand.vmem [shape: f32[2,8,128], index: 19, kind: output, shape index: {}]   ;;  %s3512_s10 = inlined_call_operand.<no memory space> [shape: f32[1,1], index: 10, kind: input, shape index: {}]  }
   0x1   :  { %3514 = sst [smem:[#allocation4_spill]] %s3493_s0  ;;  %v24_v0 = vstv %s3500_s7  ;;  %v26_v1 = vstv %s3512_s10 }
   0x2   :  { %3515 = sst [smem:[#allocation5_spill]] %s3494_s1  ;;  %25 = vst [vmem:[#allocation2] sm:$0x1] %v24_v0  ;;  %27 = vst [vmem:[#allocation3] sm:$0x1] %v26_v1  ;;  %s2924_s1 = smov 0  }
   0x3   :  { %3516 = sst [smem:[#allocation6_spill]] %s3495_s2 }
   0x4   :  { %3517 = sst [smem:[#allocation7_spill]] %s3496_s3 }
   0x5 LB: > { %s2930_s22 = sadd.s32 4294967295, %s2814_s1   ;;  %p2358_p0 = scmp.ge.s32.totalorder %s2814_s1, 1  ;;  %s2814_s1 = sphi %s2924_s1, %s33_s1  }
   0x6   : > { %p575_p1 = scmp.lt.s32.totalorder %s2814_s1, 3 }
   0x8   : > { %p576_p2 = pnand %p2358_p0, %p575_p1 }
   0x9   : > { %s3518_s2 = sld [smem:[#allocation7_spill]] (!%p576_p2)  ;;  %s2359_s25 = sshll.u32 (!%p576_p2), %s2930_s22, 2  ;;  %v2816_v5 = vmov (!%p576_p2), 0   ;;  %vm753_vm0 = vcmask (!%p576_p2), 130048   ;;  %v2388_v18 = vld [vmem:[#allocation3] ss:$0 sm:$0xff] (!%p576_p2) }
   0xa   : > { %579 = sbr.rel (%p576_p2) target bundleno = 1811 (0x713), region = 96  ;;  %2759 = vset.pattern.permute.xlu1 (!%p576_p2), %v2816_v5  ;;  %p646_p3 = scmp.lt.s32.totalorder (!%p576_p2), %s2359_s25, 7  ;;  %2758 = vset.pattern.permute.xlu0 (!%p576_p2), %v2816_v5  ;;  %v2382_v19 = vld [vmem:[#allocation2] ss:$0 sm:$0xff] (!%p576_p2)  ;;  %v949_v36 = vld [vmem:[%s3498_s5 + $0x8] sm:$0xff] (!%p576_p2)  ;;  %v951_v37 = vld [vmem:[%s3498_s5 + $0x18] sm:$0xff] (!%p576_p2) }
   0xb   : > { %s3519_s28 = sld [smem:[#allocation5_spill]] (!%p576_p2)  ;;  %s3520_s20 = sld [smem:[#allocation4_spill]] (!%p576_p2)  ;;  %v2626_v38 = vpack.c.bf16 (!%p576_p2), %v951_v37, %v949_v36  ;;  %v948_v46 = vld [vmem:[%s3498_s5] sm:$0xff] (!%p576_p2)  ;;  %v950_v47 = vld [vmem:[%s3498_s5 + $0x10] sm:$0xff] (!%p576_p2)  ;;  %v953_v51 = vld [vmem:[%s3498_s5 + $0x28] sm:$0xff] (!%p576_p2)  ;;  %v2817_v5 = vmov (!%p576_p2), 0.0  }
   0xc   : > { %s3521_s7 = sld [smem:[#allocation6_spill]] (!%p576_p2)  ;;  %v955_v52 = vld [vmem:[%s3498_s5 + $0x38] sm:$0xff] (!%p576_p2)  ;;  %v2628_v54 = vpack.c.bf16 (!%p576_p2), %v950_v47, %v948_v46  ;;  %v952_v58 = vld [vmem:[%s3498_s5 + $0x20] sm:$0xff] (!%p576_p2)  ;;  %v954_v59 = vld [vmem:[%s3498_s5 + $0x30] sm:$0xff] (!%p576_p2)  ;;  %vm1002_vm1 = vcmask (!%p576_p2), 261120   ;;  %p669_p4 = scmp.lt.s32.totalorder (!%p576_p2), %s2930_s22, 1 }
   0xd   : > { %v2630_v57 = vpack.c.bf16 (!%p576_p2), %v955_v52, %v953_v51  ;;  %v2632_v0 = vpack.c.bf16 (!%p576_p2), %v954_v59, %v952_v58  ;;  %v959_v36 = vld [vmem:[%s3501_s8 + $0x10] sm:$0xff] (!%p576_p2)  ;;  %v960_v37 = vld [vmem:[%s3501_s8 + $0x18] sm:$0xff] (!%p576_p2)  ;;  %v982_v51 = vld [vmem:[%s3501_s8 + $0xc8] sm:$0xff] (!%p576_p2) }
   0xf   : > { %v685_v2 = vld [vmem:[%s3518_s2] sm:$0xff] (!%p576_p2)  ;;  %v686_v3 = vld [vmem:[%s3518_s2 + $0x8] sm:$0xff] (!%p576_p2) }
  0x10   : > { %v2618_v4 = vpack.c.bf16 (!%p576_p2), %v686_v3, %v685_v2 }
  0x11   : > { %s3523_s25 = smov (!%p646_p3, %s2359_s25), 7  ;;  %s3525_s22 = smov (!%p669_p4, %s2930_s22), 1 }
  0x12   : > { %2623 = vmatprep.subr.bf16.mxu1 %v2618_v4  ;;  %2619 = vmatprep.subr.bf16.mxu0 %v2618_v4  ;;  %s2941_s3 = sshll.u32 %s3523_s25, 3  ;;  %v2368_v41 = vld [vmem:[%s3521_s7] ss:$0 sm:$0xff] }
  0x13   : > { %2625 = vmatpush3.bf16.msra.mxu1 %v2618_v4  ;;  %2621 = vmatpush3.bf16.msra.mxu0 %v2618_v4  ;;  %s2947_s29 = scalar_lea.vmem %s3519_s28, %s2941_s3  ;;  %s2953_s21 = scalar_lea.vmem %s3520_s20, %s2941_s3 }
  0x14   : > { %v2956_v6 = vld [vmem:[%s2947_s29 + $0x8] sm:$0xff]  ;;  %v2959_v7 = vld [vmem:[%s2953_s21] sm:$0xff]  ;;  %v2972_v11 = vld [vmem:[%s2953_s21 + $0x10] sm:$0xff]  ;;  %s661_s23 = scalar_lea.vmem %s3509_s17, %s2941_s3  ;;  %s667_s26 = scalar_lea.vmem %s3510_s18, %s2941_s3  ;;  %2627 = vmatprep.subr.bf16.mxu0 %v2626_v38 }
  0x15   : > { %v2962_v8 = vld [vmem:[%s2953_s21 + $0x8] sm:$0xff]  ;;  %726 = vperm.xlu1 %2759, %v2956_v6   ;;  %2556 = vmatprep.mubr.msk.f32.mxu1 %vm753_vm0, %v2959_v7  ;;  %v2968_v9 = vld [vmem:[%s2947_s29] sm:$0xff]  ;;  %v682_v10 = vsub.f32 1.0, %v2956_v6  ;;  %v2980_v13 = vld [vmem:[%s2953_s21 + $0x18] sm:$0xff]  ;;  %s2367_s28 = sshll.u32 %s3525_s22, 3 }
  0x16   : > { %2557 = vmatmul.mubr.msk.f32.vlgmr.msra.gmra.mrb[0].mxu1 %vm753_vm0, %v2962_v8  ;;  %v681_v12 = vsub.f32 1.0, %v2968_v9  ;;  %v2987_v14 = vld [vmem:[%s2947_s29 + $0x10] sm:$0xff]  ;;  %v2995_v16 = vld [vmem:[%s2947_s29 + $0x18] sm:$0xff]  ;;  %v1788_v20 = vld [vmem:[%s661_s23] sm:$0xff]  ;;  %s672_s7 = scalar_lea.vmem %s3511_s19, %s2367_s28 }
  0x17   : > { %2559 = vmatprep.mubr.msk.f32.mxu1 %vm753_vm0, %v2972_v11  ;;  %v683_v15 = vsub.f32 1.0, %v2987_v14  ;;  %v684_v17 = vsub.f32 1.0, %v2995_v16  ;;  %v1792_v21 = vsub.f32 1.0, %v1788_v20  ;;  %v1789_v22 = vld [vmem:[%s661_s23 + $0x8] sm:$0xff]  ;;  %v1790_v24 = vld [vmem:[%s661_s23 + $0x10] sm:$0xff]  ;;  %v1791_v26 = vld [vmem:[%s661_s23 + $0x18] sm:$0xff] }
  0x18   : > { %690 = vperm.xlu0 %2758, %v681_v12   ;;  %v1793_v23 = vsub.f32 1.0, %v1789_v22  ;;  %v1794_v25 = vsub.f32 1.0, %v1790_v24  ;;  %v1795_v27 = vsub.f32 1.0, %v1791_v26  ;;  %v2030_v28 = vld [vmem:[%s667_s26] sm:$0xff]  ;;  %v2031_v30 = vld [vmem:[%s667_s26 + $0x8] sm:$0xff]  ;;  %v2032_v32 = vld [vmem:[%s667_s26 + $0x10] sm:$0xff] }
  0x19   : > { %695 = vperm.xlu1 %2759, %v682_v10   ;;  %v2034_v29 = vsub.f32 1.0, %v2030_v28  ;;  %v2035_v31 = vsub.f32 1.0, %v2031_v30  ;;  %v2036_v33 = vsub.f32 1.0, %v2032_v32  ;;  %v2033_v34 = vld [vmem:[%s667_s26 + $0x18] sm:$0xff] }
  0x1a   : > { %2560 = vmatmul.mubr.msk.f32.gmra.mrb[2].mxu1 %vm753_vm0, %v2980_v13  ;;  %v2037_v35 = vsub.f32 1.0, %v2033_v34 }
  0x1c   : > { %721 = vperm.xlu0 %2758, %v2968_v9  }
  0x1d   : > { %731 = vperm.xlu1 %2759, %v2987_v14  }
  0x20   : > { %700 = vperm.xlu0 %2758, %v683_v15  }
  0x21   : > { %736 = vperm.xlu1 %2759, %v2995_v16  }
  0x24   : > { %705 = vperm.xlu0 %2758, %v684_v17  }
  0x25   : > { %1449 = vperm.xlu1 %2759, %v2388_v18   ;;  %v3050_v18 = vld [vmem:[%s3497_s4] ss:$0 sm:$0xff] }
  0x28   : > { %1118 = vperm.xlu0 %2758, %v2382_v19  }
  0x29   : > { %1828 = vperm.xlu1 %2759, %v1788_v20  }
  0x2c   : > { %1798 = vperm.xlu0 %2758, %v1792_v21  }
  0x2d   : > { %1833 = vperm.xlu1 %2759, %v1789_v22  }
  0x30   : > { %1803 = vperm.xlu0 %2758, %v1793_v23  }
  0x31   : > { %1838 = vperm.xlu1 %2759, %v1790_v24  }
  0x34   : > { %1808 = vperm.xlu0 %2758, %v1794_v25  }
  0x35   : > { %1843 = vperm.xlu1 %2759, %v1791_v26  }
  0x38   : > { %1813 = vperm.xlu0 %2758, %v1795_v27   ;;  %v973_v27 = vld [vmem:[%s3501_s8 + $0x80] sm:$0xff] }
  0x39   : > { %2064 = vperm.xlu1 %2759, %v2030_v28   ;;  %v974_v28 = vld [vmem:[%s3501_s8 + $0x88] sm:$0xff] }
  0x3c   : > { %2040 = vperm.xlu0 %2758, %v2034_v29   ;;  %v957_v29 = vld [vmem:[%s3501_s8] sm:$0xff] }
  0x3d   : > { %2069 = vperm.xlu1 %2759, %v2031_v30   ;;  %v2634_v30 = vpack.c.bf16 %v974_v28, %v973_v27 }
  0x3f   : > { %2635 = vmatprep.subr.bf16.mxu1 %v2634_v30 }
  0x40   : > { %2045 = vperm.xlu0 %2758, %v2035_v31   ;;  %v958_v31 = vld [vmem:[%s3501_s8 + $0x8] sm:$0xff] }
  0x41   : > { %2074 = vperm.xlu1 %2759, %v2032_v32   ;;  %v975_v32 = vld [vmem:[%s3501_s8 + $0x90] sm:$0xff] }
  0x44   : > { %2050 = vperm.xlu0 %2758, %v2036_v33   ;;  %v976_v33 = vld [vmem:[%s3501_s8 + $0x98] sm:$0xff] }
  0x45   : > { %2079 = vperm.xlu1 %2759, %v2033_v34   ;;  %v2636_v34 = vpack.c.bf16 %v958_v31, %v957_v29 }
  0x47   : > { %2637 = vmatpush3.bf16.msra.mxu1 %v2636_v34 }
  0x48   : > { %2055 = vperm.xlu0 %2758, %v2037_v35   ;;  %v3082_v35 = vpack.c.bf16 %v976_v33, %v975_v32  ;;  %v992_v33 = vlaneseq }
  0x4a   : > { %2639 = vmatprep.subr.bf16.mxu1 %v3082_v35 }
  0x94   : > { %v727_v39 = vpop.permute.xlu1 %726 }
  0x95   : > { %v740_v43 = vmul.f32 %v2368_v41, %v727_v39  ;;  %v978_v39 = vld [vmem:[%s3501_s8 + $0xa8] sm:$0xff] }
  0x97   : > { %v691_v40 = vpop.permute.xlu0 %690 }
  0x98   : > { %v696_v42 = vpop.permute.xlu1 %695  ;;  %v708_v48 = vmul.f32 %v691_v40, %v2959_v7  ;;  %v2640_v40 = vpack.c.bf16 %v960_v37, %v959_v36 }
  0x99   : > { %v709_v44 = vmul.f32 %v696_v42, %v2962_v8  ;;  %v961_v42 = vld [vmem:[%s3501_s8 + $0x20] sm:$0xff] }
  0x9a   : > { %2641 = vmatpush3.bf16.msra.mxu1 %v2640_v40 }
  0x9b   : > { %v722_v45 = vpop.permute.xlu0 %721  ;;  %v744_v55 = vadd.f32 %v740_v43, %v709_v44  ;;  %v962_v43 = vld [vmem:[%s3501_s8 + $0x28] sm:$0xff]  ;;  %v979_v44 = vld [vmem:[%s3501_s8 + $0xb0] sm:$0xff] }
  0x9c   : > { %v739_v49 = vmul.f32 %v2368_v41, %v722_v45  ;;  %v732_v50 = vpop.permute.xlu1 %731  ;;  %v980_v45 = vld [vmem:[%s3501_s8 + $0xb8] sm:$0xff]  ;;  %v2644_v46 = vpack.c.bf16 %v962_v43, %v961_v42 }
  0x9d   : > { %v741_v60 = vmul.f32 %v2368_v41, %v732_v50  ;;  %v2646_v47 = vpack.c.bf16 %v980_v45, %v979_v44  ;;  %v981_v50 = vld [vmem:[%s3501_s8 + $0xc0] sm:$0xff] }
  0x9e   : > { %v743_v53 = vadd.f32 %v739_v49, %v708_v48  ;;  %v963_v48 = vld [vmem:[%s3501_s8 + $0x30] sm:$0xff]  ;;  %v964_v49 = vld [vmem:[%s3501_s8 + $0x38] sm:$0xff] }
  0x9f   : > { %v701_v56 = vpop.permute.xlu0 %700  ;;  %v2648_v52 = vpack.c.bf16 %v964_v49, %v963_v48 }
  0xa0   : > { %v710_v61 = vmul.f32 %v701_v56, %v2972_v11  ;;  %2546 = vmatprep.mubr.msk.f32.mxu0 %vm753_vm0, %v743_v53  ;;  %v737_v62 = vpop.permute.xlu1 %736  ;;  %v2650_v53 = vpack.c.bf16 %v982_v51, %v981_v50  ;;  %v983_v56 = vld [vmem:[%s3501_s8 + $0xd0] sm:$0xff] }
  0xa1   : > { %2547 = vmatmul.mubr.msk.f32.vlgmr.msra.gmra.mrb[0].mxu0 %vm753_vm0, %v744_v55  ;;  %v742_v2 = vmul.f32 %v2368_v41, %v737_v62  ;;  %v966_v55 = vld [vmem:[%s3501_s8 + $0x48] sm:$0xff] }
  0xa2   : > { %v745_v63 = vadd.f32 %v741_v60, %v710_v61  ;;  %2629 = vmatpush1.bf16.msra.mxu0 %v2628_v54  ;;  %v967_v60 = vld [vmem:[%s3501_s8 + $0x50] sm:$0xff]  ;;  %v968_v61 = vld [vmem:[%s3501_s8 + $0x58] sm:$0xff] }
  0xa3   : > { %v706_v1 = vpop.permute.xlu0 %705  ;;  %2631 = vmatprep.subr.bf16.mxu0 %v2630_v57  ;;  %v2656_v62 = vpack.c.bf16 %v968_v61, %v967_v60 }
  0xa4   : > { %v711_v3 = vmul.f32 %v706_v1, %v2980_v13  ;;  %2549 = vmatprep.mubr.msk.f32.mxu0 %vm753_vm0, %v745_v63  ;;  %v985_v63 = vld [vmem:[%s3501_s8 + $0xe0] sm:$0xff] }
  0xa6   : > { %v746_v4 = vadd.f32 %v742_v2, %v711_v3  ;;  %2633 = vmatpush1.bf16.msra.mxu0 %v2632_v0  ;;  %v969_v2 = vld [vmem:[%s3501_s8 + $0x60] sm:$0xff]  ;;  %v970_v3 = vld [vmem:[%s3501_s8 + $0x68] sm:$0xff] }
  0xa7   : > { %2667 = vmatprep.subr.bf16.mxu0 %v2626_v38  ;;  %v977_v38 = vld [vmem:[%s3501_s8 + $0xa0] sm:$0xff] }
  0xa8   : > { %2550 = vmatmul.mubr.msk.f32.gmra.mrb[2].mxu0 %vm753_vm0, %v746_v4  ;;  %v2642_v41 = vpack.c.bf16 %v978_v39, %v977_v38  ;;  %v2660_v4 = vpack.c.bf16 %v970_v3, %v969_v2 }
  0xa9   : > { %1079 = vmatprep.mubr.f32.mxu0 %v2817_v5 }
  0xaa   : > { %2643 = vmatprep.subr.bf16.mxu1 %v2642_v41 }
  0xab   : > { %2645 = vmatpush3.bf16.msra.mxu1 %v2644_v46 }
  0xac   : > { %2647 = vmatprep.subr.bf16.mxu1 %v2646_v47 }
  0xaf   : > { %2649 = vmatpush3.bf16.msra.mxu1 %v2648_v52 }
  0xb0   : > { %2651 = vmatprep.subr.bf16.mxu1 %v2650_v53 }
  0xe9   : > { %v2558_v19 = vpop.f32.mrb[0].mxu1 }
  0xea   : > { %v929_v20 = vpop.f32.mrb[1].mxu1  ;;  %v935_v22 = vadd.f32 %v2558_v19, %v3050_v18  ;;  %v987_v19 = vld [vmem:[%s3501_s8 + $0xf0] sm:$0xff] }
  0xeb   : > { %v930_v21 = vadd.f32 %v3050_v18, %v929_v20  ;;  %v988_v20 = vld [vmem:[%s3501_s8 + $0xf8] sm:$0xff] }
  0xed   : > { %2378 = vmatmul.mubr.msk.f32.vlgmr.msra.gmra.mrb[4].mxu0 %vm1002_vm1, %v930_v21  ;;  %v2561_v23 = vpop.f32.mrb[2].mxu1  ;;  %v2662_v21 = vpack.c.bf16 %v988_v20, %v987_v19 }
  0xee   : > { %1085 = vmatprep.mubr.f32.mxu0 %v2817_v5  ;;  %v939_v24 = vpop.f32.mrb[3].mxu1  ;;  %2669 = vmatpush1.bf16.msra.mxu0 %v2628_v54  ;;  %v945_v26 = vadd.f32 %v2561_v23, %v3050_v18  ;;  %v965_v54 = vld [vmem:[%s3501_s8 + $0x40] sm:$0xff]  ;;  %v972_v23 = vld [vmem:[%s3501_s8 + $0x78] sm:$0xff] }
  0xef   : > { %2671 = vmatprep.subr.bf16.mxu0 %v2630_v57  ;;  %v940_v25 = vadd.f32 %v3050_v18, %v939_v24  ;;  %v984_v57 = vld [vmem:[%s3501_s8 + $0xd8] sm:$0xff]  ;;  %v2652_v58 = vpack.c.bf16 %v966_v55, %v965_v54 }
  0xf0   : > { %v2654_v59 = vpack.c.bf16 %v984_v57, %v983_v56 }
  0xf1   : > { %2379 = vmatmul.mubr.msk.f32.gmra.mrb[6].mxu0 %vm1002_vm1, %v935_v22  ;;  %2653 = vmatpush3.bf16.msra.mxu1 %v2652_v58  ;;  %v971_v22 = vld [vmem:[%s3501_s8 + $0x70] sm:$0xff] }
  0xf2   : > { %1091 = vmatprep.mubr.f32.mxu0 %v2817_v5  ;;  %2673 = vmatpush1.bf16.msra.mxu0 %v2632_v0  ;;  %v986_v0 = vld [vmem:[%s3501_s8 + $0xe8] sm:$0xff]  ;;  %v2664_v24 = vpack.c.bf16 %v972_v23, %v971_v22  ;;  %v1756_v23 = vmul.f32 %v2972_v11, %v2972_v11 }
  0xf3   : > { %2675 = vmatprep.subr.bf16.mxu0 %v2634_v30  ;;  %2655 = vmatprep.subr.bf16.mxu1 %v2654_v59  ;;  %v2658_v1 = vpack.c.bf16 %v986_v0, %v985_v63 }
  0xf5   : > { %2380 = vmatmul.mubr.msk.f32.gmra.mrb[8].mxu0 %vm1002_vm1, %v940_v25  ;;  %2657 = vmatpush3.bf16.msra.mxu1 %v2656_v62 }
  0xf6   : > { %1097 = vmatprep.mubr.f32.mxu0 %v2817_v5  ;;  %2659 = vmatprep.subr.bf16.mxu1 %v2658_v1 }
  0xf9   : > { %2381 = vmatmul.mubr.msk.f32.gmra.mrb[10].mxu0 %vm1002_vm1, %v945_v26  ;;  %2661 = vmatpush3.bf16.msra.mxu1 %v2660_v4 }
  0xfa   : > { %1304 = vmatprep.mubr.f32.mxu0 %v2817_v5  ;;  %2663 = vmatprep.subr.bf16.mxu1 %v2662_v21 }
  0xfd   : > { %2665 = vmatpush3.bf16.msra.mxu1 %v2664_v24 }
 0x174   : > { %v2548_v25 = vpop.f32.mrb[0].mxu0 }
 0x175   : > { %v832_v26 = vpop.f32.mrb[1].mxu0  ;;  %v3170_v28 = vadd.f32 %v2548_v25, %v3050_v18  ;;  %v1764_v25 = vsel %vm753_vm0, %v1756_v23, 0.0 }
 0x176   : > { %v3164_v27 = vadd.f32 %v3050_v18, %v832_v26 }
 0x178   : > { %2384 = vmatmul.mubr.msk.f32.vlgmr.msra.gmra.mrb[12].mxu0 %vm1002_vm1, %v3164_v27 }
 0x179   : > { %1310 = vmatprep.mubr.f32.mxu0 %v2817_v5  ;;  %2677 = vmatpush3.bf16.msra.mxu0 %v2636_v34  ;;  %v993_v34 = vshrl.u32 %v992_v33, 7 }
 0x17a   : > { %2679 = vmatprep.subr.bf16.mxu0 %v3082_v35 }
 0x17b   : > { %v2551_v29 = vpop.f32.mrb[2].mxu0  ;;  %v998_v35 = vsub.s32 1, %v993_v34 }
 0x17c   : > { %v842_v30 = vpop.f32.mrb[3].mxu0  ;;  %2385 = vmatmul.mubr.msk.f32.gmra.mrb[14].mxu0 %vm1002_vm1, %v3170_v28  ;;  %v3183_v32 = vadd.f32 %v2551_v29, %v3050_v18  ;;  %v1757_v29 = vmul.f32 %v2980_v13, %v2980_v13 }
 0x17d   : > { %v3176_v31 = vadd.f32 %v3050_v18, %v842_v30  ;;  %1316 = vmatprep.mubr.f32.mxu0 %v2817_v5  ;;  %2681 = vmatpush3.bf16.msra.mxu0 %v2640_v40  ;;  %v956_v18 = vld [vmem:[%s3499_s6] sm:$0x3] }
 0x17e   : > { %2683 = vmatprep.subr.bf16.mxu0 %v2642_v41  ;;  %v3192_v37 = vrot.slane %v956_v18, %v998_v35  ;;  %v3195_v41 = vpop.permute.xlu0 %1118 }
 0x180   : > { %2386 = vmatmul.mubr.msk.f32.gmra.mrb[16].mxu0 %vm1002_vm1, %v3176_v31 }
 0x181   : > { %1322 = vmatprep.mubr.f32.mxu0 %v2817_v5  ;;  %2685 = vmatpush3.bf16.msra.mxu0 %v2644_v46  ;;  %v994_v5 = vsub.s32 0, %v993_v34 }
 0x182   : > { %2687 = vmatprep.subr.bf16.mxu0 %v2646_v47 }
 0x183   : > { %v3190_v36 = vrot.slane %v956_v18, %v994_v5 }
 0x184   : > { %2387 = vmatmul.mubr.msk.f32.gmra.mrb[18].mxu0 %vm1002_vm1, %v3183_v32 }
 0x185   : > { %2689 = vmatpush3.bf16.msra.mxu0 %v2648_v52 }
 0x186   : > { %2691 = vmatprep.subr.bf16.mxu0 %v2650_v53 }
 0x189   : > { %2693 = vmatpush3.bf16.msra.mxu0 %v2652_v58 }
 0x18a   : > { %2695 = vmatprep.subr.bf16.mxu0 %v2654_v59 }
 0x18d   : > { %2697 = vmatpush3.bf16.msra.mxu0 %v2656_v62 }
 0x18e   : > { %2699 = vmatprep.subr.bf16.mxu0 %v2658_v1 }
 0x191   : > { %2701 = vmatpush3.bf16.msra.mxu0 %v2660_v4 }
 0x192   : > { %2703 = vmatprep.subr.bf16.mxu0 %v2662_v21  ;;  %v1755_v21 = vmul.f32 %v2962_v8, %v2962_v8  ;;  %v1767_v8 = vsel %vm753_vm0, %v1757_v29, 0.0 }
 0x194   : > { %v1761_v22 = vsel %vm753_vm0, %v1755_v21, 0.0 }
 0x195   : > { %2705 = vmatpush3.bf16.msra.mxu0 %v2664_v24  ;;  %1762 = vadd.xlane.f32.xlu1 %v1761_v22  ;;  %v1754_v24 = vmul.f32 %v2959_v7, %v2959_v7 }
 0x197   : > { %v1758_v26 = vsel %vm753_vm0, %v1754_v24, 0.0  ;;  %v1460_v24 = vld [vmem:[%s3503_s11] sm:$0xff] }
 0x198   : > { %1759 = vadd.xlane.f32.xlu0 %v1758_v26 }
 0x199   : > { %1765 = vadd.xlane.f32.xlu1 %v1764_v25  ;;  %v1461_v25 = vld [vmem:[%s3503_s11 + $0x8] sm:$0xff] }
 0x19c   : > { %1768 = vadd.xlane.f32.xlu0 %v1767_v8 }
 0x1c0   : > { %v1081_v38 = vpop.f32.mrb[4].mxu0 }
 0x1c1   : > { %v1082_v39 = vadd.f32 %v1081_v38, %v3190_v36  ;;  %v1083_v40 = vpop.f32.mrb[5].mxu0 }
 0x1c2   : > { %v1084_v42 = vadd.f32 %v1083_v40, %v3192_v37 }
 0x1c3   : > { %v1121_v43 = vmul.f32 %v3195_v41, %v1082_v39  ;;  %vm1104_vm2 = vcmp.gt.f32.partialorder %v1082_v39, 0.0 }
 0x1c4   : > { %v1122_v44 = vmul.f32 %v3195_v41, %v1084_v42  ;;  %v1087_v45 = vpop.f32.mrb[6].mxu0  ;;  %vm1105_vm3 = vcmp.gt.f32.partialorder %v1084_v42, 0.0 }
 0x1c5   : > { %v1088_v46 = vadd.f32 %v1087_v45, %v3190_v36  ;;  %v1089_v47 = vpop.f32.mrb[7].mxu0  ;;  %v1129_v50 = vsel %vm1104_vm2, %v1082_v39, %v1121_v43 }
 0x1c6   : > { %v1090_v48 = vadd.f32 %v1089_v47, %v3192_v37  ;;  %v1130_v49 = vsel %vm1105_vm3, %v1084_v42, %v1122_v44 }
 0x1c7   : > { %v1123_v51 = vmul.f32 %v3195_v41, %v1088_v46  ;;  %1207 = vmatprep.mubr.f32.mxu1 %v1130_v49  ;;  %vm1106_vm5 = vcmp.gt.f32.partialorder %v1088_v46, 0.0 }
 0x1c8   : > { %v1124_v52 = vmul.f32 %v3195_v41, %v1090_v48  ;;  %v1093_v53 = vpop.f32.mrb[8].mxu0  ;;  %1208 = vmatmul.mubr.f32.vlgmr.msra.gmra.mrb[4].mxu1 %v1129_v50  ;;  %vm1107_vm4 = vcmp.gt.f32.partialorder %v1090_v48, 0.0 }
 0x1c9   : > { %v1094_v54 = vadd.f32 %v1093_v53, %v3190_v36  ;;  %v1095_v55 = vpop.f32.mrb[9].mxu0  ;;  %v1131_v59 = vsel %vm1106_vm5, %v1088_v46, %v1123_v51 }
 0x1ca   : > { %v1096_v56 = vadd.f32 %v1095_v55, %v3192_v37  ;;  %v1132_v57 = vsel %vm1107_vm4, %v1090_v48, %v1124_v52 }
 0x1cb   : > { %v1125_v58 = vmul.f32 %v3195_v41, %v1094_v54  ;;  %1212 = vmatprep.mubr.f32.mxu1 %v1132_v57  ;;  %vm1108_vm7 = vcmp.gt.f32.partialorder %v1094_v54, 0.0 }
 0x1cc   : > { %v1126_v60 = vmul.f32 %v3195_v41, %v1096_v56  ;;  %v1099_v61 = vpop.f32.mrb[10].mxu0  ;;  %1213 = vmatmul.mubr.f32.gmra.mrb[6].mxu1 %v1131_v59  ;;  %vm1109_vm6 = vcmp.gt.f32.partialorder %v1096_v56, 0.0 }
 0x1cd   : > { %v1100_v62 = vadd.f32 %v1099_v61, %v3190_v36  ;;  %v1101_v63 = vpop.f32.mrb[11].mxu0  ;;  %v1133_v3 = vsel %vm1108_vm7, %v1094_v54, %v1125_v58 }
 0x1ce   : > { %v1102_v0 = vadd.f32 %v1101_v63, %v3192_v37  ;;  %v1134_v1 = vsel %vm1109_vm6, %v1096_v56, %v1126_v60 }
 0x1cf   : > { %v1127_v2 = vmul.f32 %v3195_v41, %v1100_v62  ;;  %1217 = vmatprep.mubr.f32.mxu1 %v1134_v1  ;;  %vm1110_vm9 = vcmp.gt.f32.partialorder %v1100_v62, 0.0 }
 0x1d0   : > { %v1128_v4 = vmul.f32 %v3195_v41, %v1102_v0  ;;  %1218 = vmatmul.mubr.f32.gmra.mrb[8].mxu1 %v1133_v3  ;;  %vm1111_vm8 = vcmp.gt.f32.partialorder %v1102_v0, 0.0 }
 0x1d1   : > { %v1135_v20 = vsel %vm1110_vm9, %v1100_v62, %v1127_v2 }
 0x1d2   : > { %v1136_v19 = vsel %vm1111_vm8, %v1102_v0, %v1128_v4 }
 0x1d3   : > { %1222 = vmatprep.mubr.f32.mxu1 %v1136_v19 }
 0x1d4   : > { %1223 = vmatmul.mubr.f32.gmra.mrb[10].mxu1 %v1135_v20 }
 0x24b   : > { %v1306_v30 = vpop.f32.mrb[12].mxu0 }
 0x24c   : > { %v1307_v33 = vadd.f32 %v1306_v30, %v3190_v36  ;;  %v1308_v34 = vpop.f32.mrb[13].mxu0  ;;  %v2706_v30 = vpack.c.bf16 %v1461_v25, %v1460_v24 }
 0x24d   : > { %v1309_v11 = vadd.f32 %v1308_v34, %v3192_v37 }
 0x24e   : > { %v1337_v7 = vmul.f32 %v1307_v33, %v3195_v41  ;;  %vm1329_vm10 = vcmp.gt.f32.partialorder %v1307_v33, 0.0  ;;  %2707 = vmatprep.subr.bf16.mxu1 %v2706_v30 }
 0x24f   : > { %v1338_v5 = vmul.f32 %v1309_v11, %v3195_v41  ;;  %v1312_v18 = vpop.f32.mrb[14].mxu0  ;;  %vm1330_vm11 = vcmp.gt.f32.partialorder %v1309_v11, 0.0  ;;  %2709 = vmatpush3.bf16.msra.mxu1 %v2706_v30 }
 0x250   : > { %v1313_v35 = vadd.f32 %v1312_v18, %v3190_v36  ;;  %v1314_v38 = vpop.f32.mrb[15].mxu0  ;;  %v1345_v40 = vsel %vm1329_vm10, %v1307_v33, %v1337_v7  ;;  %v1463_v18 = vld [vmem:[%s3503_s11 + $0x18] sm:$0xff] }
 0x251   : > { %v1315_v13 = vadd.f32 %v1314_v38, %v3192_v37  ;;  %v1346_v39 = vsel %vm1330_vm11, %v1309_v11, %v1338_v5  ;;  %v1462_v5 = vld [vmem:[%s3503_s11 + $0x10] sm:$0xff]  ;;  %v1665_v38 = vld [vmem:[%s3505_s13] sm:$0xff] }
 0x252   : > { %v1339_v42 = vmul.f32 %v1313_v35, %v3195_v41  ;;  %1417 = vmatprep.mubr.f32.mxu0 %v1346_v39  ;;  %vm1331_vm13 = vcmp.gt.f32.partialorder %v1313_v35, 0.0 }
 0x253   : > { %v1340_v43 = vmul.f32 %v1315_v13, %v3195_v41  ;;  %v1318_v44 = vpop.f32.mrb[16].mxu0  ;;  %1418 = vmatmul.mubr.f32.vlgmr.msra.gmra.mrb[20].mxu0 %v1345_v40  ;;  %vm1332_vm12 = vcmp.gt.f32.partialorder %v1315_v13, 0.0 }
 0x254   : > { %v1319_v45 = vadd.f32 %v1318_v44, %v3190_v36  ;;  %v1320_v46 = vpop.f32.mrb[17].mxu0  ;;  %v1347_v50 = vsel %vm1331_vm13, %v1313_v35, %v1339_v42  ;;  %v2710_v35 = vpack.c.bf16 %v1463_v18, %v1462_v5 }
 0x255   : > { %v1321_v47 = vadd.f32 %v1320_v46, %v3192_v37  ;;  %v1348_v48 = vsel %vm1332_vm12, %v1315_v13, %v1340_v43  ;;  %v1666_v13 = vld [vmem:[%s3505_s13 + $0x8] sm:$0xff]  ;;  %v1450_v46 = vpop.permute.xlu1 %1449 }
 0x256   : > { %v1341_v49 = vmul.f32 %v1319_v45, %v3195_v41  ;;  %1422 = vmatprep.mubr.f32.mxu0 %v1348_v48  ;;  %vm1333_vm15 = vcmp.gt.f32.partialorder %v1319_v45, 0.0  ;;  %2711 = vmatprep.subr.bf16.mxu1 %v2710_v35  ;;  %v2714_v39 = vpack.c.bf16 %v1666_v13, %v1665_v38 }
 0x257   : > { %v1342_v51 = vmul.f32 %v1321_v47, %v3195_v41  ;;  %v1324_v52 = vpop.f32.mrb[18].mxu0  ;;  %1423 = vmatmul.mubr.f32.gmra.mrb[22].mxu0 %v1347_v50  ;;  %vm1334_vm14 = vcmp.gt.f32.partialorder %v1321_v47, 0.0  ;;  %2713 = vmatpush3.bf16.msra.mxu1 %v2710_v35 }
 0x258   : > { %v1325_v53 = vadd.f32 %v1324_v52, %v3190_v36  ;;  %v1326_v54 = vpop.f32.mrb[19].mxu0  ;;  %v1349_v58 = vsel %vm1333_vm15, %v1319_v45, %v1341_v49  ;;  %v3243_v36 = vld [vmem:[%s3502_s9] ss:$0 sm:$0xff]  ;;  %2715 = vmatprep.subr.bf16.mxu1 %v2714_v39 }
 0x259   : > { %v1327_v55 = vadd.f32 %v1326_v54, %v3192_v37  ;;  %v1350_v56 = vsel %vm1334_vm14, %v1321_v47, %v1342_v51  ;;  %v1668_v54 = vld [vmem:[%s3505_s13 + $0x18] sm:$0xff] }
 0x25a   : > { %v1343_v57 = vmul.f32 %v1325_v53, %v3195_v41  ;;  %1427 = vmatprep.mubr.f32.mxu0 %v1350_v56  ;;  %vm1335_vm3 = vcmp.gt.f32.partialorder %v1325_v53, 0.0 }
 0x25b   : > { %v1344_v59 = vmul.f32 %v1327_v55, %v3195_v41  ;;  %1428 = vmatmul.mubr.f32.gmra.mrb[24].mxu0 %v1349_v58  ;;  %vm1336_vm2 = vcmp.gt.f32.partialorder %v1327_v55, 0.0 }
 0x25c   : > { %v1351_v61 = vsel %vm1335_vm3, %v1325_v53, %v1343_v57  ;;  %v1667_v53 = vld [vmem:[%s3505_s13 + $0x10] sm:$0xff] }
 0x25d   : > { %v1352_v60 = vsel %vm1336_vm2, %v1327_v55, %v1344_v59  ;;  %v2718_v58 = vpack.c.bf16 %v1668_v54, %v1667_v53 }
 0x25e   : > { %1432 = vmatprep.mubr.f32.mxu0 %v1352_v60 }
 0x25f   : > { %1433 = vmatmul.mubr.f32.gmra.mrb[26].mxu0 %v1351_v61 }
 0x29b   : > { %v2454_v62 = vpop.f32.mrb[4].mxu1 }
 0x29c   : > { %v2455_v37 = vpop.f32.mrb[5].mxu1 }
 0x29d   : > { %v2456_v63 = vadd.f32 %v2455_v37, %v2454_v62 }
 0x29f   : > { %v3246_v0 = vadd.f32 %v2456_v63, %v3243_v36  ;;  %v2457_v1 = vpop.f32.mrb[6].mxu1 }
 0x2a0   : > { %v2458_v41 = vpop.f32.mrb[7].mxu1 }
 0x2a1   : > { %v2459_v2 = vadd.f32 %v2458_v41, %v2457_v1  ;;  %v1596_v3 = vmul.f32 %v3246_v0, %v3246_v0 }
 0x2a3   : > { %v3251_v4 = vadd.f32 %v2459_v2, %v3243_v36  ;;  %v2460_v19 = vpop.f32.mrb[8].mxu1  ;;  %v1600_v20 = vsel %vm1002_vm1, %v1596_v3, 0.0 }
 0x2a4   : > { %v2461_v21 = vpop.f32.mrb[9].mxu1  ;;  %1601 = vadd.xlane.f32.xlu1 %v1600_v20  ;;  %v1784_v20 = vld [vmem:[%s3507_s15 + $0x8] sm:$0xff] }
 0x2a5   : > { %v2462_v22 = vadd.f32 %v2461_v21, %v2460_v19  ;;  %v1597_v23 = vmul.f32 %v3251_v4, %v3251_v4  ;;  %v1783_v19 = vld [vmem:[%s3507_s15] sm:$0xff] }
 0x2a6   : > { %v3311_v21 = vpack.c.bf16 %v1784_v20, %v1783_v19 }
 0x2a7   : > { %v3263_v26 = vadd.f32 %v2462_v22, %v3243_v36  ;;  %v2463_v29 = vpop.f32.mrb[10].mxu1  ;;  %v1603_v8 = vsel %vm1002_vm1, %v1597_v23, 0.0  ;;  %v1799_v22 = vpop.permute.xlu0 %1798 }
 0x2a8   : > { %v2464_v33 = vpop.f32.mrb[11].mxu1  ;;  %1604 = vadd.xlane.f32.xlu0 %v1603_v8  ;;  %2731 = vmatprep.subr.bf16.mxu0 %v3311_v21 }
 0x2a9   : > { %v3266_v34 = vadd.f32 %v2464_v33, %v2463_v29  ;;  %v1598_v11 = vmul.f32 %v3263_v26, %v3263_v26  ;;  %2733 = vmatpush3.bf16.msra.mxu0 %v3311_v21  ;;  %v2389_v33 = vld [vmem:[%s3504_s12] ss:$0 sm:$0xff] }
 0x2ab   : > { %v1606_v7 = vsel %vm1002_vm1, %v1598_v11, 0.0  ;;  %v1804_v24 = vpop.permute.xlu0 %1803 }
 0x2ac   : > { %1607 = vadd.xlane.f32.xlu1 %v1606_v7 }
 0x2af   : > { %v1809_v29 = vpop.permute.xlu0 %1808 }
 0x2b3   : > { %v1814_v30 = vpop.permute.xlu0 %1813 }
 0x2b7   : > { %v2041_v35 = vpop.permute.xlu0 %2040 }
 0x326   : > { %v2498_v40 = vpop.f32.mrb[20].mxu0 }
 0x327   : > { %v2499_v42 = vpop.f32.mrb[21].mxu0 }
 0x328   : > { %v2500_v43 = vadd.f32 %v2499_v42, %v2498_v40 }
 0x32a   : > { %v1420_v44 = vadd.f32 %v2500_v43, %v3243_v36  ;;  %v2501_v45 = vpop.f32.mrb[22].mxu0 }
 0x32b   : > { %v2502_v47 = vpop.f32.mrb[23].mxu0 }
 0x32c   : > { %v1452_v48 = vmul.f32 %v1450_v46, %v1420_v44  ;;  %v2503_v49 = vadd.f32 %v2502_v47, %v2501_v45  ;;  %vm1439_vm4 = vcmp.gt.f32.partialorder %v1420_v44, 0.0 }
 0x32e   : > { %v1425_v50 = vadd.f32 %v2503_v49, %v3243_v36  ;;  %v2504_v51 = vpop.f32.mrb[24].mxu0  ;;  %v1456_v52 = vsel %vm1439_vm4, %v1420_v44, %v1452_v48  ;;  %v2046_v44 = vpop.permute.xlu0 %2045  ;;  %v2398_v48 = vld [vmem:[%s3506_s14] ss:$0 sm:$0xff] }
 0x32f   : > { %v2505_v55 = vpop.f32.mrb[25].mxu0  ;;  %2570 = vmatprep.mubr.msk.f32.mxu1 %vm1002_vm1, %v1456_v52 }
 0x330   : > { %vm1440_vm5 = vcmp.gt.f32.partialorder %v1425_v50, 0.0  ;;  %v1453_v56 = vmul.f32 %v1450_v46, %v1425_v50  ;;  %v2506_v57 = vadd.f32 %v2505_v55, %v2504_v51 }
 0x332   : > { %v1457_v59 = vsel %vm1440_vm5, %v1425_v50, %v1453_v56  ;;  %v1430_v60 = vadd.f32 %v2506_v57, %v3243_v36  ;;  %v2507_v61 = vpop.f32.mrb[26].mxu0 }
 0x333   : > { %v2508_v62 = vpop.f32.mrb[27].mxu0  ;;  %2571 = vmatmul.mubr.msk.f32.vlgmr.msra.gmra.mrb[12].mxu1 %vm1002_vm1, %v1457_v59 }
 0x334   : > { %v1454_v37 = vmul.f32 %v1450_v46, %v1430_v60  ;;  %v2509_v63 = vadd.f32 %v2508_v62, %v2507_v61  ;;  %vm1441_vm6 = vcmp.gt.f32.partialorder %v1430_v60, 0.0  ;;  %2717 = vmatpush3.bf16.msra.mxu1 %v2714_v39 }
 0x335   : > { %2719 = vmatprep.subr.bf16.mxu1 %v2718_v58 }
 0x336   : > { %v1435_v1 = vadd.f32 %v2509_v63, %v3243_v36  ;;  %v1458_v41 = vsel %vm1441_vm6, %v1430_v60, %v1454_v37 }
 0x337   : > { %2573 = vmatprep.mubr.msk.f32.mxu1 %vm1002_vm1, %v1458_v41 }
 0x338   : > { %v1455_v2 = vmul.f32 %v1450_v46, %v1435_v1  ;;  %vm1442_vm7 = vcmp.gt.f32.partialorder %v1435_v1, 0.0  ;;  %2721 = vmatpush3.bf16.msra.mxu1 %v2718_v58  ;;  %v2051_v58 = vpop.permute.xlu0 %2050 }
 0x339   : > { %2723 = vmatprep.subr.bf16.mxu1 %v3311_v21 }
 0x33a   : > { %v1459_v3 = vsel %vm1442_vm7, %v1435_v1, %v1455_v2 }
 0x33b   : > { %2574 = vmatmul.mubr.msk.f32.gmra.mrb[14].mxu1 %vm1002_vm1, %v1459_v3 }
 0x33c   : > { %2584 = vmatprep.mubr.msk.f32.mxu1 %vm1002_vm1, %v3164_v27  ;;  %v1785_v27 = vld [vmem:[%s3507_s15 + $0x10] sm:$0xff] }
 0x33f   : > { %2585 = vmatmul.mubr.msk.f32.vlgmr.msra.gmra.mrb[16].mxu1 %vm1002_vm1, %v3170_v28  ;;  %v1786_v28 = vld [vmem:[%s3507_s15 + $0x18] sm:$0xff] }
 0x340   : > { %2587 = vmatprep.mubr.msk.f32.mxu1 %vm1002_vm1, %v3176_v31  ;;  %2725 = vmatpush3.bf16.msra.mxu1 %v3311_v21  ;;  %v3323_v31 = vpack.c.bf16 %v1786_v28, %v1785_v27 }
 0x342   : > { %2727 = vmatprep.subr.bf16.mxu1 %v3323_v31  ;;  %2735 = vmatprep.subr.bf16.mxu0 %v3323_v31 }
 0x343   : > { %2588 = vmatmul.mubr.msk.f32.gmra.mrb[18].mxu1 %vm1002_vm1, %v3183_v32  ;;  %2737 = vmatpush3.bf16.msra.mxu0 %v3323_v31  ;;  %v1829_v32 = vpop.permute.xlu1 %1828 }
 0x344   : > { %2729 = vmatpush3.bf16.msra.mxu1 %v3323_v31  ;;  %v1846_v52 = vmul.f32 %v2398_v48, %v1829_v32 }
 0x345   : > { %2738 = vmatprep.subr.bf16.mxu1 %v3311_v21 }
 0x347   : > { %v1834_v23 = vpop.permute.xlu1 %1833 }
 0x348   : > { %v1847_v62 = vmul.f32 %v2398_v48, %v1834_v23 }
 0x34b   : > { %v1839_v25 = vpop.permute.xlu1 %1838 }
 0x34c   : > { %v1848_v27 = vmul.f32 %v2398_v48, %v1839_v25 }
 0x34f   : > { %v1844_v8 = vpop.permute.xlu1 %1843 }
 0x353   : > { %v2065_v7 = vpop.permute.xlu1 %2064 }
 0x354   : > { %v2082_v56 = vmul.f32 %v2398_v48, %v2065_v7 }
 0x357   : > { %v2070_v43 = vpop.permute.xlu1 %2069 }
 0x358   : > { %v2083_v37 = vmul.f32 %v2398_v48, %v2070_v43 }
 0x35b   : > { %v2075_v57 = vpop.permute.xlu1 %2074 }
 0x35c   : > { %v2084_v23 = vmul.f32 %v2398_v48, %v2075_v57 }
 0x406   : > { %v2572_v11 = vpop.f32.mrb[12].mxu1 }
 0x407   : > { %v3333_v5 = vadd.f32 %v2572_v11, %v2389_v33  ;;  %v1549_v18 = vpop.f32.mrb[13].mxu1 }
 0x408   : > { %v3335_v38 = vadd.f32 %v2389_v33, %v1549_v18 }
 0x409   : > { %v1569_v13 = vmul.f32 %v3333_v5, %v3333_v5 }
 0x40a   : > { %v1568_v39 = vmul.f32 %v3335_v38, %v3335_v38 }
 0x40b   : > { %v1575_v40 = vsel %vm1002_vm1, %v1569_v13, 0.0 }
 0x40c   : > { %1576 = vadd.xlane.f32.xlu0 %v1575_v40  ;;  %v1572_v42 = vsel %vm1002_vm1, %v1568_v39, 0.0 }
 0x40d   : > { %1573 = vadd.xlane.f32.xlu1 %v1572_v42 }
 0x40e   : > { %v2575_v45 = vpop.f32.mrb[14].mxu1 }
 0x40f   : > { %v3343_v46 = vadd.f32 %v2575_v45, %v2389_v33  ;;  %v1559_v47 = vpop.f32.mrb[15].mxu1 }
 0x410   : > { %v3348_v49 = vadd.f32 %v2389_v33, %v1559_v47  ;;  %v2056_v33 = vpop.permute.xlu0 %2055  ;;  %v2399_v47 = vld [vmem:[%s3508_s16] ss:$0 sm:$0xff] }
 0x412   : > { %v2586_v50 = vpop.f32.mrb[16].mxu1  ;;  %v1570_v51 = vmul.f32 %v3348_v49, %v3348_v49 }
 0x413   : > { %v1817_v53 = vmul.f32 %v2586_v50, %v1804_v24  ;;  %v2059_v54 = vmul.f32 %v2586_v50, %v2046_v44  ;;  %v1735_v55 = vpop.f32.mrb[17].mxu1  ;;  %v2080_v24 = vpop.permute.xlu1 %2079 }
 0x414   : > { %v1816_v59 = vmul.f32 %v1799_v22, %v1735_v55  ;;  %v2058_v60 = vmul.f32 %v2041_v35, %v1735_v55  ;;  %v1578_v61 = vsel %vm1002_vm1, %v1570_v51, 0.0  ;;  %v1849_v22 = vmul.f32 %v2398_v48, %v1844_v8 }
 0x415   : > { %1579 = vadd.xlane.f32.xlu0 %v1578_v61  ;;  %v1851_v2 = vadd.f32 %v1847_v62, %v1817_v53  ;;  %v2087_v3 = vadd.f32 %v2083_v37, %v2059_v54 }
 0x416   : > { %v1850_v63 = vadd.f32 %v1846_v52, %v1816_v59  ;;  %v2086_v1 = vadd.f32 %v2082_v56, %v2058_v60  ;;  %v2589_v41 = vpop.f32.mrb[18].mxu1 }
 0x417   : > { %v1819_v19 = vmul.f32 %v2589_v41, %v1814_v30  ;;  %v1745_v20 = vpop.f32.mrb[19].mxu1  ;;  %v2061_v7 = vmul.f32 %v2589_v41, %v2056_v33  ;;  %v3364_v18 = vpop.xlane.xlu1 %1762 }
 0x418   : > { %v1818_v28 = vmul.f32 %v1809_v29, %v1745_v20  ;;  %v2060_v32 = vmul.f32 %v2051_v58, %v1745_v20  ;;  %2598 = vmatprep.mubr.msk.f32.mxu1 %vm1002_vm1, %v1850_v63  ;;  %2612 = vmatprep.mubr.msk.f32.mxu0 %vm1002_vm1, %v2086_v1  ;;  %v2085_v29 = vmul.f32 %v2398_v48, %v2080_v24 }
 0x419   : > { %2599 = vmatmul.mubr.msk.f32.vlgmr.msra.gmra.mrb[20].mxu1 %vm1002_vm1, %v1851_v2  ;;  %2613 = vmatmul.mubr.msk.f32.vlgmr.msra.gmra.mrb[28].mxu0 %vm1002_vm1, %v2087_v3  ;;  %v1853_v30 = vadd.f32 %v1849_v22, %v1819_v19 }
 0x41a   : > { %v1852_v11 = vadd.f32 %v1848_v27, %v1818_v28  ;;  %2740 = vmatpush3.bf16.msra.mxu1 %v3311_v21  ;;  %v2088_v25 = vadd.f32 %v2084_v23, %v2060_v32  ;;  %v2089_v8 = vadd.f32 %v2085_v29, %v2061_v7  ;;  %v3366_v21 = vpop.xlane.xlu0 %1759 }
 0x41b   : > { %2739 = vmatprep.subr.bf16.mxu1 %v3323_v31  ;;  %v3368_v35 = vpop.xlane.xlu1 %1765 }
 0x41c   : > { %2601 = vmatprep.mubr.msk.f32.mxu1 %vm1002_vm1, %v1852_v11 }
 0x41d   : > { %2602 = vmatmul.mubr.msk.f32.gmra.mrb[22].mxu1 %vm1002_vm1, %v1853_v30 }
 0x41e   : > { %2741 = vmatpush3.bf16.msra.mxu1 %v3323_v31  ;;  %2615 = vmatprep.mubr.msk.f32.mxu1 %vm1002_vm1, %v2088_v25  ;;  %v3370_v13 = vpop.xlane.xlu0 %1768 }
 0x41f   : > { %v1602_v39 = vpop.xlane.xlu1 %1601 }
 0x420   : > { %v1612_v48 = vmax.f32 %v1602_v39, 1e-24 }
 0x421   : > { %2616 = vmatmul.mubr.msk.f32.vlgmr.msra.gmra.mrb[24].mxu1 %vm1002_vm1, %v2089_v8 }
 0x422   : > { %v1605_v40 = vpop.xlane.xlu0 %1604 }
 0x423   : > { %v1608_v42 = vpop.xlane.xlu1 %1607  ;;  %v1613_v3 = vmax.f32 %v1605_v40, 1e-24 }
 0x424   : > { %v1614_v58 = vmax.f32 %v1608_v42, 1e-24  ;;  %v1571_v42 = vmul.f32 %v3343_v46, %v3343_v46 }
 0x499   : > { %v1577_v43 = vpop.xlane.xlu0 %1576 }
 0x49a   : > { %v1574_v44 = vpop.xlane.xlu1 %1573  ;;  %v1585_v60 = vmax.f32 %v1577_v43, 1e-24 }
 0x49b   : > { %v1584_v45 = vmax.f32 %v1574_v44, 1e-24 }
 0x49d   : > { %2760 = vrsqrt.f32 %v1584_v45 }
 0x49e   : > { %2762 = vrsqrt.f32 %v1612_v48 }
 0x4a2   : > { %v1580_v31 = vpop.xlane.xlu0 %1579 }
 0x4a3   : > { %v1586_v50 = vmax.f32 %v1580_v31, 1e-24  ;;  %v3417_v31 = vadd.f32 %v3266_v34, %v3243_v36 }
 0x4a5   : > { %2764 = vrsqrt.f32 %v1586_v50  ;;  %v1599_v36 = vmul.f32 %v3417_v31, %v3417_v31 }
 0x4a6   : > { %2766 = vrsqrt.f32 %v1614_v58 }
 0x4a7   : > { %2768 = vrsqrt.f32 %v1585_v60  ;;  %v2761_v11 = vpop.eup %2760 }
 0x4a8   : > { %2770 = vrsqrt.f32 %v1613_v3  ;;  %v2763_v7 = vpop.eup %2762  ;;  %v1592_v43 = vmul.f32 %v2761_v11, %v3335_v38 }
 0x4a9   : > { %v1620_v44 = vmul.f32 %v2763_v7, %v3246_v0 }
 0x4af   : > { %v2765_v39 = vpop.eup %2764 }
 0x4b0   : > { %v2767_v45 = vpop.eup %2766  ;;  %v1594_v38 = vmul.f32 %v2765_v39, %v3348_v49  ;;  %v1609_v49 = vsel %vm1002_vm1, %v1599_v36, 0.0  ;;  %v2800_v39 = vld [vmem:[%s2953_s21 + $0x8] sm:$0xff] }
 0x4b1   : > { %v2769_v50 = vpop.eup %2768  ;;  %v1622_v0 = vmul.f32 %v2767_v45, %v3263_v26 }
 0x4b2   : > { %v1593_v34 = vmul.f32 %v2769_v50, %v3333_v5 }
 0x4ec   : > { %v2600_v51 = vpop.f32.mrb[20].mxu1  ;;  %v2614_v52 = vpop.f32.mrb[28].mxu0 }
 0x4ed   : > { %v3375_v53 = vadd.f32 %v2600_v51, %v2399_v47  ;;  %v3377_v54 = vadd.f32 %v2614_v52, %v2399_v47  ;;  %v1938_v55 = vpop.f32.mrb[21].mxu1  ;;  %v2168_v56 = vpop.f32.mrb[29].mxu0  ;;  %v1581_v51 = vsel %vm1002_vm1, %v1571_v42, 0.0  ;;  %v1624_v52 = vmul.f32 %v1620_v44, %v1592_v43 }
 0x4ee   : > { %v3379_v57 = vadd.f32 %v2399_v47, %v2168_v56  ;;  %v3385_v37 = vadd.f32 %v2399_v47, %v1938_v55  ;;  %v2771_v55 = vpop.eup %2770 }
 0x4ef   : > { %v1958_v59 = vmul.f32 %v3375_v53, %v3375_v53  ;;  %v2188_v2 = vmul.f32 %v3377_v54, %v3377_v54  ;;  %v1628_v58 = vsel %vm1002_vm1, %v1624_v52, 0.0  ;;  %v1621_v60 = vmul.f32 %v2771_v55, %v3251_v4 }
 0x4f0   : > { %v2603_v61 = vpop.f32.mrb[22].mxu1  ;;  %v2187_v62 = vmul.f32 %v3379_v57, %v3379_v57  ;;  %v1957_v24 = vmul.f32 %v3385_v37, %v3385_v37 }
 0x4f1   : > { %v3387_v63 = vadd.f32 %v2603_v61, %v2399_v47  ;;  %v1948_v1 = vpop.f32.mrb[23].mxu1  ;;  %v1964_v41 = vsel %vm753_vm0, %v1958_v59, 0.0  ;;  %v2194_v22 = vsel %vm753_vm0, %v2188_v2, 0.0  ;;  %v1626_v59 = vmul.f32 %v1622_v0, %v1594_v38 }
 0x4f2   : > { %1965 = vadd.xlane.f32.xlu0 %v1964_v41  ;;  %v2191_v19 = vsel %vm753_vm0, %v2187_v62, 0.0  ;;  %v3395_v28 = vadd.f32 %v2399_v47, %v1948_v1  ;;  %v1961_v29 = vsel %vm753_vm0, %v1957_v24, 0.0  ;;  %v1625_v61 = vmul.f32 %v1621_v60, %v1593_v34  ;;  %v2801_v34 = vld [vmem:[%s2953_s21 + $0x18] sm:$0xff] }
 0x4f3   : > { %2192 = vadd.xlane.f32.xlu1 %v2191_v19  ;;  %v1960_v20 = vmul.f32 %v3387_v63, %v3387_v63  ;;  %v1634_v26 = vsel %vm1002_vm1, %v1626_v59, 0.0  ;;  %v1771_v1 = vmax.f32 %v3364_v18, 1e-24  ;;  %v1773_v41 = vmax.f32 %v3370_v13, 1e-24 }
 0x4f4   : > { %v2617_v27 = vpop.f32.mrb[24].mxu1  ;;  %v1959_v8 = vmul.f32 %v3395_v28, %v3395_v28  ;;  %v1631_v62 = vsel %vm1002_vm1, %v1625_v61, 0.0 }
 0x4f5   : > { %v2178_v32 = vpop.f32.mrb[25].mxu1  ;;  %v1970_v23 = vsel %vm753_vm0, %v1960_v20, 0.0  ;;  %v3405_v25 = vadd.f32 %v2617_v27, %v2399_v47  ;;  %2772 = vrsqrt.f32 %v1771_v1  ;;  %v1770_v20 = vmax.f32 %v3366_v21, 1e-24 }
 0x4f6   : > { %v3401_v33 = vadd.f32 %v2399_v47, %v2178_v32  ;;  %2195 = vadd.xlane.f32.xlu0 %v2194_v22  ;;  %v1967_v47 = vsel %vm753_vm0, %v1959_v8, 0.0  ;;  %v1772_v22 = vmax.f32 %v3368_v35, 1e-24 }
 0x4f7   : > { %1971 = vadd.xlane.f32.xlu1 %v1970_v23  ;;  %v2190_v48 = vmul.f32 %v3405_v25, %v3405_v25 }
 0x4f8   : > { %v2189_v30 = vmul.f32 %v3401_v33, %v3401_v33 }
 0x4f9   : > { %v2200_v56 = vsel %vm753_vm0, %v2190_v48, 0.0 }
 0x4fa   : > { %1962 = vadd.xlane.f32.xlu0 %v1961_v29  ;;  %v2197_v40 = vsel %vm753_vm0, %v2189_v30, 0.0 }
 0x4fb   : > { %2198 = vadd.xlane.f32.xlu1 %v2197_v40 }
 0x4fe   : > { %1968 = vadd.xlane.f32.xlu0 %v1967_v47 }
 0x4ff   : > { %1582 = vadd.xlane.f32.xlu1 %v1581_v51  ;;  %v2773_v30 = vpop.eup %2772 }
 0x500   : > { %v1779_v35 = vmul.f32 %v2800_v39, %v2773_v30 }
 0x502   : > { %2201 = vadd.xlane.f32.xlu0 %v2200_v56 }
 0x503   : > { %1629 = vadd.xlane.f32.xlu1 %v1628_v58 }
 0x506   : > { %1610 = vadd.xlane.f32.xlu0 %v1609_v49 }
 0x507   : > { %1635 = vadd.xlane.f32.xlu1 %v1634_v26  ;;  %v2802_v26 = vld [vmem:[%s2953_s21] sm:$0xff] }
 0x50a   : > { %1632 = vadd.xlane.f32.xlu0 %v1631_v62 }
 0x57f   : > { %v1966_v5 = vpop.xlane.xlu0 %1965 }
 0x580   : > { %v1974_v2 = vmax.f32 %v1966_v5, 1e-24  ;;  %v2193_v3 = vpop.xlane.xlu1 %2192 }
 0x581   : > { %v2203_v19 = vmax.f32 %v2193_v3, 1e-24 }
 0x582   : > { %2774 = vrsqrt.f32 %v1974_v2  ;;  %v2803_v2 = vld [vmem:[%s2953_s21 + $0x10] sm:$0xff] }
 0x583   : > { %v2196_v4 = vpop.xlane.xlu0 %2195  ;;  %2776 = vrsqrt.f32 %v1773_v41 }
 0x584   : > { %v2204_v27 = vmax.f32 %v2196_v4, 1e-24  ;;  %v1972_v32 = vpop.xlane.xlu1 %1971  ;;  %2778 = vrsqrt.f32 %v2203_v19 }
 0x585   : > { %v1976_v23 = vmax.f32 %v1972_v32, 1e-24 }
 0x586   : > { %2780 = vrsqrt.f32 %v2204_v27 }
 0x587   : > { %2782 = vrsqrt.f32 %v1976_v23  ;;  %v1963_v18 = vpop.xlane.xlu0 %1962 }
 0x588   : > { %2784 = vrsqrt.f32 %v1770_v20  ;;  %v1973_v13 = vmax.f32 %v1963_v18, 1e-24  ;;  %v2199_v24 = vpop.xlane.xlu1 %2198 }
 0x589   : > { %2786 = vrsqrt.f32 %v1772_v22  ;;  %v2205_v11 = vmax.f32 %v2199_v24, 1e-24 }
 0x58a   : > { %2788 = vrsqrt.f32 %v1973_v13 }
 0x58b   : > { %2790 = vrsqrt.f32 %v2205_v11  ;;  %v1969_v21 = vpop.xlane.xlu0 %1968 }
 0x58c   : > { %v2775_v7 = vpop.eup %2774  ;;  %v1975_v29 = vmax.f32 %v1969_v21, 1e-24  ;;  %v1583_v8 = vpop.xlane.xlu1 %1582 }
 0x58d   : > { %v1982_v40 = vmul.f32 %v2775_v7, %v3375_v53  ;;  %v2777_v42 = vpop.eup %2776  ;;  %v1587_v48 = vmax.f32 %v1583_v8, 1e-24 }
 0x58e   : > { %2792 = vrsqrt.f32 %v1975_v29  ;;  %v2779_v43 = vpop.eup %2778  ;;  %v1781_v58 = vmul.f32 %v2801_v34, %v2777_v42 }
 0x58f   : > { %v2202_v44 = vpop.xlane.xlu0 %2201  ;;  %v1986_v45 = vmul.f32 %v1982_v40, %v1779_v35  ;;  %v2211_v49 = vmul.f32 %v2779_v43, %v3379_v57 }
 0x590   : > { %v2781_v47 = vpop.eup %2780  ;;  %v2206_v50 = vmax.f32 %v2202_v44, 1e-24  ;;  %v1630_v39 = vpop.xlane.xlu1 %1629 }
 0x591   : > { %v2783_v51 = vpop.eup %2782  ;;  %v1992_v52 = vsel %vm753_vm0, %v1986_v45, 0.0  ;;  %v2212_v38 = vmul.f32 %v2781_v47, %v3377_v54 }
 0x592   : > { %v2785_v55 = vpop.eup %2784  ;;  %2794 = vrsqrt.f32 %v2206_v50  ;;  %1993 = vadd.xlane.f32.xlu0 %v1992_v52  ;;  %v1984_v53 = vmul.f32 %v2783_v51, %v3387_v63 }
 0x593   : > { %v2787_v0 = vpop.eup %2786  ;;  %v1611_v56 = vpop.xlane.xlu0 %1610  ;;  %v2216_v36 = vmul.f32 %v2212_v38, %v1779_v35  ;;  %2796 = vrsqrt.f32 %v1587_v48  ;;  %v1778_v62 = vmul.f32 %v2802_v26, %v2785_v55  ;;  %v1640_v48 = vsub.f32 1.0, %v1630_v39 }
 0x594   : > { %v2789_v59 = vpop.eup %2788  ;;  %v1615_v60 = vmax.f32 %v1611_v56, 1e-24  ;;  %v1988_v5 = vmul.f32 %v1984_v53, %v1781_v58  ;;  %v1780_v3 = vmul.f32 %v2803_v2, %v2787_v0  ;;  %v1636_v40 = vpop.xlane.xlu1 %1635 }
 0x595   : > { %v2791_v61 = vpop.eup %2790  ;;  %v2222_v54 = vsel %vm753_vm0, %v2216_v36, 0.0  ;;  %v1981_v1 = vmul.f32 %v2789_v59, %v3385_v37  ;;  %v2215_v4 = vmul.f32 %v2211_v49, %v1778_v62  ;;  %v1642_v56 = vsub.f32 1.0, %v1636_v40 }
 0x596   : > { %2798 = vrsqrt.f32 %v1615_v60  ;;  %2223 = vadd.xlane.f32.xlu0 %v2222_v54  ;;  %v2213_v63 = vmul.f32 %v2791_v61, %v3401_v33  ;;  %v1998_v57 = vsel %vm753_vm0, %v1988_v5, 0.0  ;;  %v1644_v34 = vmul.f32 %v1640_v48, %v681_v12  ;;  %v2805_v61 = vld [vmem:[%s2947_s29 + $0x8] sm:$0xff] }
 0x597   : > { %v1985_v41 = vmul.f32 %v1981_v1, %v1778_v62  ;;  %v2219_v22 = vsel %vm753_vm0, %v2215_v4, 0.0  ;;  %v1646_v5 = vmul.f32 %v1642_v56, %v683_v15 }
 0x598   : > { %v2793_v19 = vpop.eup %2792  ;;  %v2217_v27 = vmul.f32 %v2213_v63, %v1780_v3 }
 0x599   : > { %v1989_v20 = vsel %vm753_vm0, %v1985_v41, 0.0  ;;  %v1983_v32 = vmul.f32 %v2793_v19, %v3395_v28  ;;  %v2806_v19 = vld [vmem:[%s2947_s29 + $0x18] sm:$0xff] }
 0x59a   : > { %1990 = vadd.xlane.f32.xlu1 %v1989_v20  ;;  %1999 = vadd.xlane.f32.xlu0 %v1998_v57  ;;  %v2225_v23 = vsel %vm753_vm0, %v2217_v27, 0.0 }
 0x59b   : > { %v1987_v33 = vmul.f32 %v1983_v32, %v1780_v3 }
 0x59c   : > { %v2795_v37 = vpop.eup %2794 }
 0x59d   : > { %v2214_v18 = vmul.f32 %v2795_v37, %v3405_v25  ;;  %v2797_v13 = vpop.eup %2796  ;;  %v1995_v11 = vsel %vm753_vm0, %v1987_v33, 0.0  ;;  %v1633_v25 = vpop.xlane.xlu0 %1632  ;;  %v2807_v37 = vld [vmem:[%s2947_s29 + $0x10] sm:$0xff] }
 0x59e   : > { %2220 = vadd.xlane.f32.xlu1 %v2219_v22  ;;  %2226 = vadd.xlane.f32.xlu0 %v2225_v23  ;;  %v1595_v21 = vmul.f32 %v2797_v13, %v3343_v46  ;;  %v1641_v46 = vsub.f32 1.0, %v1633_v25 }
 0x59f   : > { %v2218_v30 = vmul.f32 %v2214_v18, %v1781_v58  ;;  %v2804_v58 = vld [vmem:[%s2947_s29] sm:$0xff] }
 0x5a0   : > { %v2799_v24 = vpop.eup %2798  ;;  %v1645_v53 = vmul.f32 %v1641_v46, %v682_v10 }
 0x5a1   : > { %v1623_v28 = vmul.f32 %v2799_v24, %v3417_v31  ;;  %v2228_v29 = vsel %vm753_vm0, %v2218_v30, 0.0  ;;  %vm1648_vm0 = vcmask 7168  }
 0x5a2   : > { %1996 = vadd.xlane.f32.xlu1 %v1995_v11  ;;  %v1650_v1 = vsel %vm1648_vm0, %v1645_v53, 0.0  ;;  %v1649_v12 = vsel %vm1648_vm0, %v1644_v34, 0.0  ;;  %v1652_v33 = vsel %vm1648_vm0, %v1646_v5, 0.0 }
 0x5a3   : > { %v1627_v7 = vmul.f32 %v1623_v28, %v1595_v21  ;;  %v1651_v27 = vadd.f32 %v1650_v1, %v1649_v12 }
 0x5a5   : > { %v1637_v8 = vsel %vm1002_vm1, %v1627_v7, 0.0  ;;  %v1653_v21 = vadd.f32 %v1652_v33, %v1651_v27 }
 0x5a6   : > { %2229 = vadd.xlane.f32.xlu1 %v2228_v29  ;;  %1638 = vadd.xlane.f32.xlu0 %v1637_v8 }
 0x61f   : > { %v1994_v35 = vpop.xlane.xlu0 %1993 }
 0x620   : > { %v2002_v43 = vsub.f32 1.0, %v1994_v35 }
 0x622   : > { %v2006_v51 = vmul.f32 %v2002_v43, %v2002_v43 }
 0x623   : > { %v2224_v42 = vpop.xlane.xlu0 %2223 }
 0x624   : > { %v2232_v31 = vsub.f32 1.0, %v2224_v42  ;;  %v2010_v54 = vmul.f32 %v2805_v61, %v2006_v51 }
 0x626   : > { %v2236_v36 = vmul.f32 %v2232_v31, %v2232_v31  ;;  %v2014_v3 = vsel %vm1648_vm0, %v2010_v54, 0.0 }
 0x627   : > { %v2000_v44 = vpop.xlane.xlu0 %1999  ;;  %v1991_v45 = vpop.xlane.xlu1 %1990 }
 0x628   : > { %v2001_v47 = vsub.f32 1.0, %v1991_v45  ;;  %v2004_v52 = vsub.f32 1.0, %v2000_v44  ;;  %v2240_v9 = vmul.f32 %v2805_v61, %v2236_v36 }
 0x62a   : > { %v2005_v50 = vmul.f32 %v2001_v47, %v2001_v47  ;;  %v2008_v26 = vmul.f32 %v2004_v52, %v2004_v52  ;;  %v2244_v23 = vsel %vm1648_vm0, %v2240_v9, 0.0 }
 0x62b   : > { %v2227_v38 = vpop.xlane.xlu0 %2226  ;;  %v2221_v55 = vpop.xlane.xlu1 %2220 }
 0x62c   : > { %v2231_v0 = vsub.f32 1.0, %v2221_v55  ;;  %v2009_v59 = vmul.f32 %v2804_v58, %v2005_v50  ;;  %v2233_v60 = vsub.f32 1.0, %v2227_v38  ;;  %v2012_v4 = vmul.f32 %v2806_v19, %v2008_v26 }
 0x62e   : > { %v2235_v49 = vmul.f32 %v2231_v0, %v2231_v0  ;;  %v2013_v63 = vsel %vm1648_vm0, %v2009_v59, 0.0  ;;  %v2237_v41 = vmul.f32 %v2233_v60, %v2233_v60  ;;  %v2018_v25 = vsel %vm1648_vm0, %v2012_v4, 0.0 }
 0x62f   : > { %v1997_v62 = vpop.xlane.xlu1 %1996  ;;  %v2015_v18 = vadd.f32 %v2014_v3, %v2013_v63 }
 0x630   : > { %v2239_v6 = vmul.f32 %v2804_v58, %v2235_v49  ;;  %v2003_v10 = vsub.f32 1.0, %v1997_v62  ;;  %v2241_v13 = vmul.f32 %v2807_v37, %v2237_v41 }
 0x632   : > { %v2007_v2 = vmul.f32 %v2003_v10, %v2003_v10  ;;  %v2243_v32 = vsel %vm1648_vm0, %v2239_v6, 0.0  ;;  %v2246_v40 = vsel %vm1648_vm0, %v2241_v13, 0.0 }
 0x633   : > { %v1639_v20 = vpop.xlane.xlu0 %1638  ;;  %v2230_v57 = vpop.xlane.xlu1 %2229  ;;  %v2245_v7 = vadd.f32 %v2244_v23, %v2243_v32 }
 0x634   : > { %v2011_v22 = vmul.f32 %v2807_v37, %v2007_v2  ;;  %v1643_v14 = vsub.f32 1.0, %v1639_v20  ;;  %v2234_v15 = vsub.f32 1.0, %v2230_v57 }
 0x635   : > { %v2247_v16 = vadd.f32 %v2246_v40, %v2245_v7 }
 0x636   : > { %v1647_v24 = vmul.f32 %v1643_v14, %v684_v17  ;;  %v2238_v11 = vmul.f32 %v2234_v15, %v2234_v15  ;;  %v2016_v30 = vsel %vm1648_vm0, %v2011_v22, 0.0 }
 0x637   : > { %v2017_v28 = vadd.f32 %v2016_v30, %v2015_v18 }
 0x638   : > { %v2242_v29 = vmul.f32 %v2806_v19, %v2238_v11  ;;  %v1654_v8 = vsel %vm1648_vm0, %v1647_v24, 0.0 }
 0x639   : > { %v1655_v39 = vadd.f32 %v1654_v8, %v1653_v21  ;;  %v2019_v35 = vadd.f32 %v2018_v25, %v2017_v28 }
 0x63a   : > { %v2248_v42 = vsel %vm1648_vm0, %v2242_v29, 0.0 }
 0x63b   : > { %1656 = vadd.xlane.f32.xlu1 %v1655_v39  ;;  %2020 = vadd.xlane.f32.xlu0 %v2019_v35  ;;  %v2249_v17 = vadd.f32 %v2248_v42, %v2247_v16 }
 0x63f   : > { %2250 = vadd.xlane.f32.xlu1 %v2249_v17 }
 0x6c8   : > { %v2021_v43 = vpop.xlane.xlu0 %2020  ;;  %v1657_v44 = vpop.xlane.xlu1 %1656 }
 0x6c9   : > { %v2022_v45 = vrot.slane %v2021_v43, 4  ;;  %v1658_v46 = vrot.slane %v1657_v44, 4 }
 0x6cb   : > { %v2023_v47 = vadd.f32 %v2022_v45, %v2021_v43  ;;  %v1659_v31 = vadd.f32 %v1658_v46, %v1657_v44 }
 0x6cc   : > { %v2251_v48 = vpop.xlane.xlu1 %2250 }
 0x6cd   : > { %v2024_v50 = vrot.slane %v2023_v47, 2  ;;  %v1660_v51 = vrot.slane %v1659_v31, 2  ;;  %v2252_v52 = vrot.slane %v2251_v48, 4 }
 0x6cf   : > { %v2025_v38 = vadd.f32 %v2024_v50, %v2023_v47  ;;  %v2253_v55 = vadd.f32 %v2252_v52, %v2251_v48  ;;  %v1661_v53 = vadd.f32 %v1660_v51, %v1659_v31 }
 0x6d1   : > { %v2254_v0 = vrot.slane %v2253_v55, 2  ;;  %v1662_v56 = vrot.slane %v1661_v53, 1  ;;  %v2026_v36 = vrot.slane %v2025_v38, 1 }
 0x6d3   : > { %v2255_v34 = vadd.f32 %v2254_v0, %v2253_v55  ;;  %v1663_v58 = vadd.f32 %v1662_v56, %v1661_v53  ;;  %v2027_v59 = vadd.f32 %v2026_v36, %v2025_v38 }
 0x6d5   : > { %2742 = vpush %v1663_v58  ;;  %v2256_v60 = vrot.slane %v2255_v34, 1 }
 0x6d6   : > { %2744 = vpush %v2027_v59 }
 0x6d7   : > { %v2257_v49 = vadd.f32 %v2256_v60, %v2255_v34 }
 0x6d9   : > { %2746 = vpush %v2257_v49 }
 0x706   : > { %s2743_s29 = spop %2742 }
 0x707   : > { %s2745_s21 = spop %2744  ;;  %s2261_s27 = smul.f32 0.022222223, %s2743_s29 }
 0x70a   : > { %s2747_s26 = spop %2746 }
 0x70b   : > { %s2259_s3 = sadd.f32 %s2747_s26, %s2745_s21 }
 0x70d   : > { %s2260_s0 = smul.f32 0.05263158, %s2259_s3 }
 0x70f   : > { %s2262_s10 = sadd.f32 %s2261_s27, %s2260_s0 }
 0x711   : > { %v2263_v61 = vstv %s2262_s10 }
 0x712   : > { %2264 = vst [vmem:[%s672_s7] sm:$0xff] %v2263_v61 }
 0x713 PF: > { %s33_s1 = sadd.s32 1, %s2814_s1  }
 0x714   : > { %p30_p5 = scmp.ge.s32.totalorder %s33_s1, 4  }
 0x716   :  { %32 = sbr.rel (!%p30_p5) target bundleno = 5 (0x5), region = 135 }

</bundles_post_ra>
